<compile_context>
chip_gen: v7x
topology: tpu7x:2x2x1
jax: 0.10.0
libtpu: 0.0.40
codegen_flags: <defaults>
</compile_context>

<pallas_src>
import functools

import numpy as np
import jax
import jax.numpy as jnp
from jax.experimental import pallas as pl
from jax.experimental.pallas import tpu as pltpu

# (in_channels, out_channels, stride) of conv2_x .. conv7_x
BLOCK_CFG = [
    (4, 4, 2),
    (4, 4, 1),
    (4, 8, 2),
    (8, 8, 1),
    (8, 16, 2),
    (16, 16, 1),
]

BN_EPS = 1e-5
CP = 16            # channel padding width (max channels in the net)
WCOL = 2 * CP      # weight/vector slab width (fused conv-a + shortcut needs 2*CP)
OFF = 2            # first activation row in the scratch (row OFF-1 = masked left pad)


# ----------------------------- Pallas kernel --------------------------------
def build_kernel(plan, Bc, L0, num_classes):
    """Kernel body with all parameter-slab offsets baked in.  Bc = batch chunk."""
    f32, bf16 = jnp.float32, jnp.bfloat16

    def kernel(x_ref, w_ref, v_ref, out_ref, xs_ref):
        mask_cache = {}

        def masks(m_out, l_out):
            # hoisted: one iota+mod per unique (m_out, l_out), reused by all convs
            key = (m_out, l_out)
            if key not in mask_cache:
                jl = jax.lax.broadcasted_iota(jnp.int32, (m_out, 1), 0) % l_out
                mask_cache[key] = (jl == 0, jl == l_out - 1)
            return mask_cache[key]

        def vrow(r, n=CP):                       # [1, n] f32 per-channel vector
            return v_ref[r:r + 1, 0:n]

        def store_act(x, m):
            # layer input lives at scratch rows OFF..OFF+m-1; rows OFF-1 / OFF+m
            # are only ever read at masked positions.
            xs_ref[pl.ds(OFF, m), :] = x.astype(f32)

        def conv3(m_in, l_in, stride, w_off, n_out, bias_row):
            # k=3, pad=1 conv (channels-last, batch folded into rows) as three
            # accumulating MXU matmuls over the taps -- no im2col slab.
            l_out = (l_in - 1) // stride + 1
            m_out = (m_in // l_in) * l_out
            left, right = masks(m_out, l_out)
            acc = None
            for k in range(3):
                start = OFF + k - 1
                if stride == 1:
                    t = xs_ref[pl.ds(start, m_out), :]
                else:
                    t = xs_ref[pl.ds(start, m_out, stride=stride), :]
                if k == 0:                        # left zero-pad / batch edge
                    t = jnp.where(left, 0.0, t)
                elif k == 2 and stride == 1:      # right zero-pad / batch edge
                    t = jnp.where(right, 0.0, t)
                w = w_ref[w_off + k * CP:w_off + (k + 1) * CP, 0:n_out]
                p = jnp.dot(t.astype(bf16), w, preferred_element_type=f32)
                acc = p if acc is None else acc + p
            if bias_row is not None:
                acc = acc + vrow(bias_row, n_out)
            return acc, l_out, m_out

        # ---- conv1: Conv1d(1, 4, k=3, pad=1, stride=2, bias=False) ----
        M, L = Bc * L0, L0
        store_act(x_ref[...], M)                       # bf16 input -> f32 scratch
        x, L, M = conv3(M, L, 2, plan['conv1'], CP, None)

        # ---- residual blocks (conv2_x .. conv7_x) ----
        for e in plan['blocks']:
            store_act(x, M)
            if e['fused']:
                # conv-a and the 1x1 projection shortcut share one matmul (N=2*CP)
                y, L2, M2 = conv3(M, L, e['stride'], e['wa'], 2 * CP, e['ba'])
                ra = jnp.maximum(y[:, :CP], 0.0)
                sc = y[:, CP:2 * CP]
            else:
                ra, L2, M2 = conv3(M, L, e['stride'], e['wa'], CP, e['ba'])
                ra = jnp.maximum(ra, 0.0)
                sc = x                                 # identity shortcut (live f32)
            store_act(ra, M2)
            rb, _, _ = conv3(M2, L2, 1, e['wb'], CP, e['bb'])
            x = jnp.maximum(rb + sc, 0.0)
            L, M = L2, M2

        # ---- final BN + ReLU ----
        x = jnp.maximum(x * vrow(plan['bnf_s']) + vrow(plan['bnf_b']), 0.0)

        # ---- adaptive-avg-pool(1): per-batch-element mean (sublane reduction,
        #      no O(B^2) mask matmul) ----
        inv_l = 1.0 / L
        rows = [jnp.sum(x[b * L:(b + 1) * L, :], axis=0, keepdims=True) * inv_l
                for b in range(Bc)]
        pooled = rows[0] if Bc == 1 else jnp.concatenate(rows, axis=0)   # [Bc, CP]

        # ---- fully connected ----
        fw = w_ref[plan['fc_w']:plan['fc_w'] + CP, 0:CP]
        logits = jnp.dot(pooled.astype(bf16), fw, preferred_element_type=f32)
        logits = logits + vrow(plan['fc_b'])
        out_ref[0, :, :] = logits[:, :num_classes]     # [Bc, num_classes]

    return kernel


# ------------------------------ wrapper --------------------------------------
def rsnet_forward(x_ncl, w_slab, v_slab, plan, num_classes, batch_chunk=1):
    """x_ncl: PyTorch layout [B, 1, L] -> returns [B, num_classes]."""
    B, cin, L0 = x_ncl.shape
    assert cin == 1
    assert L0 % 16 == 0, "L0 must be divisible by 16 (4 stride-2 layers)"
    assert num_classes <= CP
    assert B % batch_chunk == 0
    G = B // batch_chunk
    Mc = batch_chunk * L0

    # channels-last flat slab [B*L0, CP] bf16 (channel 0 = data, rest zero)
    x_pad = jnp.pad(x_ncl.reshape(B * L0, 1),
                    ((0, 0), (0, CP - 1))).astype(jnp.bfloat16)

    kernel = build_kernel(plan, batch_chunk, L0, num_classes)

    # explicit VMEM budget (review: v7x has 64 MiB physical / 32 MiB scoped default)
    need = ((Mc + 8) * CP * 4            # f32 activation scratch
            + 2 * Mc * CP * 2            # double-buffered bf16 input block
            + 2 * (w_slab.size * 2 + v_slab.size * 4)
            + 6 * Mc * CP * 4            # live f32 activation values
            + (1 << 20))
    vmem_limit = int(min(48 * 2**20, max(16 * 2**20, 2 * need)))

    out = pl.pallas_call(
        kernel,
        out_shape=jax.ShapeDtypeStruct((G, batch_chunk, num_classes), jnp.float32),
        grid_spec=pltpu.PrefetchScalarGridSpec(
            num_scalar_prefetch=0,
            grid=(G,),
            in_specs=[
                pl.BlockSpec((Mc, CP), lambda g: (g, 0)),
                pl.BlockSpec(w_slab.shape, lambda g: (0, 0)),
                pl.BlockSpec(v_slab.shape, lambda g: (0, 0)),
            ],
            out_specs=pl.BlockSpec((1, batch_chunk, num_classes),
                                   lambda g: (g, 0, 0)),
            scratch_shapes=[
                pltpu.VMEM((Mc + 8, CP), jnp.float32),      # activation scratch
            ],
        ),
        compiler_params=pltpu.CompilerParams(
            dimension_semantics=("parallel",),
            vmem_limit_bytes=vmem_limit),
    )(x_pad, w_slab, v_slab)
    return out.reshape(B, num_classes)


# --------------------------- parameters ---------------------------------------
def init_raw_params(key, num_classes):
    """Raw parameters in PyTorch layout: Conv1d weight [Cout, Cin, K],
    BatchNorm1d (gamma, beta, running_mean, running_var), Linear [out, in]."""
    keys = jax.random.split(key, 128)
    ki = iter(range(128))

    def nk():
        return keys[next(ki)]

    def conv_w(cout, cin, k):
        fan_in = cin * k
        return jax.random.normal(nk(), (cout, cin, k), jnp.float32) * np.sqrt(
            2.0 / fan_in)

    def bn_p(c):
        return dict(
            gamma=1.0 + 0.1 * jax.random.normal(nk(), (c,), jnp.float32),
            beta=0.1 * jax.random.normal(nk(), (c,), jnp.float32),
            mean=0.1 * jax.random.normal(nk(), (c,), jnp.float32),
            var=0.5 + jax.random.uniform(nk(), (c,), jnp.float32),
        )

    p = dict(conv1_w=conv_w(4, 1, 3), blocks=[])
    for (cin, cout, stride) in BLOCK_CFG:
        blk = dict(stride=stride,
                   wa=conv_w(cout, cin, 3), bna=bn_p(cout),
                   wb=conv_w(cout, cout, 3), bnb=bn_p(cout))
        if stride != 1 or cin != cout:
            blk['wsc'] = conv_w(cout, cin, 1)
            blk['bnsc'] = bn_p(cout)
        p['blocks'].append(blk)
    p['bnf'] = bn_p(16)
    p['fc_w'] = jax.random.normal(nk(), (num_classes, 16), jnp.float32) * np.sqrt(1.0 / 16)
    p['fc_b'] = 0.1 * jax.random.normal(nk(), (num_classes,), jnp.float32)
    return p


def _bn_scale_bias(bn):
    s = bn['gamma'] / jnp.sqrt(bn['var'] + BN_EPS)
    return s, bn['beta'] - s * bn['mean']


def pack_params(raw, num_classes):
    """Fold BN into conv weights/biases and pack everything into two slabs:
       w_slab (bf16 matmul weights, width 2*CP) + v_slab (f32 per-channel rows).
       Projection-shortcut blocks get a fused [3*CP, 2*CP] weight block
       (shortcut embedded in the k=1 rows of the second CP columns)."""
    w_blocks, v_rows = [], []

    def add_w(mat):
        off = sum(b.shape[0] for b in w_blocks)
        if mat.shape[1] < WCOL:
            mat = jnp.pad(mat, ((0, 0), (0, WCOL - mat.shape[1])))
        w_blocks.append(mat)
        return off

    def add_v(vec):
        if vec.shape[0] < WCOL:
            vec = jnp.pad(vec, (0, WCOL - vec.shape[0]))
        v_rows.append(vec)
        return len(v_rows) - 1

    def pack3(w_oik, scale=None):               # [Cout, Cin, 3] -> [3*CP, CP]
        if scale is not None:
            w_oik = w_oik * scale[:, None, None]
        cout, cin, _ = w_oik.shape
        w_kic = jnp.transpose(w_oik, (2, 1, 0))                 # [3, Cin, Cout]
        w_kic = jnp.pad(w_kic, ((0, 0), (0, CP - cin), (0, CP - cout)))
        return w_kic.reshape(3 * CP, CP)        # row = k*CP + cin, col = cout

    def pack1(w_oik, scale):                    # [Cout, Cin, 1] -> [CP, CP]
        w = (w_oik * scale[:, None, None])[:, :, 0]
        w = jnp.transpose(w, (1, 0))                            # [Cin, Cout]
        return jnp.pad(w, ((0, CP - w.shape[0]), (0, CP - w.shape[1])))

    def padv(v):
        return jnp.pad(v, (0, CP - v.shape[0]))

    plan = {'conv1': add_w(pack3(raw['conv1_w'])), 'blocks': []}
    for blk in raw['blocks']:
        sa, ba = _bn_scale_bias(blk['bna'])
        sb, bb = _bn_scale_bias(blk['bnb'])
        fused = 'wsc' in blk
        wa = pack3(blk['wa'], sa)                               # [3*CP, CP]
        if fused:
            ssc, bsc = _bn_scale_bias(blk['bnsc'])
            sc_cols = jnp.zeros((3 * CP, CP), jnp.float32)
            sc_cols = sc_cols.at[CP:2 * CP, :].set(pack1(blk['wsc'], ssc))
            wa = jnp.concatenate([wa, sc_cols], axis=1)         # [3*CP, 2*CP]
            bias_a = jnp.concatenate([padv(ba), padv(bsc)])     # [2*CP]
        else:
            bias_a = padv(ba)
        e = dict(stride=blk['stride'], fused=fused,
                 wa=add_w(wa), ba=add_v(bias_a),
                 wb=add_w(pack3(blk['wb'], sb)), bb=add_v(padv(bb)))
        plan['blocks'].append(e)

    sf, bfv = _bn_scale_bias(raw['bnf'])
    plan['bnf_s'] = add_v(padv(sf))
    plan['bnf_b'] = add_v(padv(bfv))
    plan['fc_w'] = add_w(jnp.pad(raw['fc_w'].T, ((0, 0), (0, CP - num_classes))))
    plan['fc_b'] = add_v(padv(raw['fc_b']))

    w_slab = jnp.concatenate(w_blocks, axis=0).astype(jnp.bfloat16)
    v_slab = jnp.stack(v_rows, axis=0).astype(jnp.float32)
    pad_rows = (-v_slab.shape[0]) % 8
    if pad_rows:
        v_slab = jnp.pad(v_slab, ((0, pad_rows), (0, 0)))
    return w_slab, v_slab, plan


# ---------------------- plain-JAX reference (for checking) --------------------
def rsnet_ref(x_ncl, raw, num_classes):
    def conv(x, w, stride, pad):
        return jax.lax.conv_general_dilated(
            x, w, (stride,), [(pad, pad)],
            dimension_numbers=("NCH", "OIH", "NCH"))

    def bn(x, p):
        s = p['gamma'] / jnp.sqrt(p['var'] + BN_EPS)
        b = p['beta'] - s * p['mean']
        return x * s[None, :, None] + b[None, :, None]

    out = conv(x_ncl, raw['conv1_w'], 2, 1)
    for blk in raw['blocks']:
        r = jax.nn.relu(bn(conv(out, blk['wa'], blk['stride'], 1), blk['bna']))
        r = bn(conv(r, blk['wb'], 1, 1), blk['bnb'])
        if 'wsc' in blk:
            sc = bn(conv(out, blk['wsc'], blk['stride'], 0), blk['bnsc'])
        else:
            sc = out
        out = jax.nn.relu(r + sc)
    out = jax.nn.relu(bn(out, raw['bnf']))
    pooled = jnp.mean(out, axis=2)                               # [B, 16]
    return pooled @ raw['fc_w'].T + raw['fc_b'][None, :]


# ----------------------------------- main -------------------------------------
if __name__ == "__main__":
    B, L0, num_classes = 2, 64, 4
    key = jax.random.PRNGKey(0)
    kx, kp = jax.random.split(key)

    # PyTorch Conv1d input layout: [B, C=1, L]
    x = jax.random.normal(kx, (B, 1, L0), jnp.float32)
    raw = init_raw_params(kp, num_classes)
    w_slab, v_slab, plan = pack_params(raw, num_classes)

    fwd = jax.jit(functools.partial(rsnet_forward, plan=plan,
                                    num_classes=num_classes, batch_chunk=1))
    out = fwd(x, w_slab, v_slab)
    out = jax.block_until_ready(out)
    assert out.shape == (B, num_classes)

    ref = rsnet_ref(x, raw, num_classes)
    out_np = np.asarray(out, dtype=np.float64)
    ref_np = np.asarray(ref, dtype=np.float64)
    err = np.max(np.abs(out_np - ref_np)) / (np.max(np.abs(ref_np)) + 1e-6)
    if err > 2.5e-2:   # bf16 matmul inputs, f32 accumulation
        raise AssertionError(
            f"Pallas kernel does not match JAX reference (norm. max err {err:.3e})")

    print("KERNEL_OK")
</pallas_src>

<mosaic_0001>
module attributes {stable_mosaic.version = 11 : i64} {
  func.func @kernel(%arg0: i32, %arg1: memref<64x16xbf16, #tpu.memory_space<vmem>>, %arg2: memref<640x32xbf16, #tpu.memory_space<vmem>>, %arg3: memref<16x32xf32, #tpu.memory_space<vmem>>, %arg4: memref<1x1x4xf32, #tpu.memory_space<vmem>>, %arg5: memref<72x16xf32, #tpu.memory_space<vmem>>) attributes {dimension_semantics = [#tpu.dimension_semantics<parallel>], iteration_bounds = array<i64: 2>, scalar_prefetch = 0 : i64, scratch_operands = 1 : i64, tpu.core_type = #tpu.core_type<tc>, window_params = [{transform_indices = @transform_0, window_bounds = array<i64: 64, 16>}, {pipeline_mode = #tpu.pipeline_mode<synchronous>, transform_indices = @transform_1, window_bounds = array<i64: 640, 32>}, {pipeline_mode = #tpu.pipeline_mode<synchronous>, transform_indices = @transform_2, window_bounds = array<i64: 16, 32>}, {transform_indices = @transform_3, window_bounds = array<i64: 1, 1, 4>}]} {
    %c0 = arith.constant 0 : index
    %c0_0 = arith.constant 0 : index
    %0 = vector.load %arg1[%c0, %c0_0] : memref<64x16xbf16, #tpu.memory_space<vmem>>, vector<64x16xbf16>
    %1 = arith.extf %0 : vector<64x16xbf16> to vector<64x16xf32>
    %c2 = arith.constant 2 : index
    %c0_1 = arith.constant 0 : index
    %2 = vector.load %arg5[%c2, %c0_1] : memref<72x16xf32, #tpu.memory_space<vmem>>, vector<64x16xf32>
    tpu.vector_store %arg5[%c2, %c0_1], %1 {strides = array<i32>} : memref<72x16xf32, #tpu.memory_space<vmem>>, vector<64x16xf32>,
    %3 = tpu.iota {dimensions = array<i32: 0>} : vector<32x1xi32>
    %c32_i32 = arith.constant 32 : i32
    %c0_i32 = arith.constant 0 : i32
    %4 = arith.cmpi eq, %c32_i32, %c0_i32 : i32
    %c1_i32 = arith.constant 1 : i32
    %5 = arith.select %4, %c1_i32, %c32_i32 : i32
    %6 = vector.broadcast %5 : i32 to vector<32x1xi32>
    %7 = arith.remsi %3, %6 : vector<32x1xi32>
    %c0_i32_2 = arith.constant 0 : i32
    %8 = vector.broadcast %c0_i32_2 : i32 to vector<32x1xi32>
    %9 = arith.cmpi ne, %7, %8 : vector<32x1xi32>
    %c0_i32_3 = arith.constant 0 : i32
    %10 = vector.broadcast %c0_i32_3 : i32 to vector<32x1xi32>
    %11 = arith.cmpi slt, %7, %10 : vector<32x1xi32>
    %c0_i32_4 = arith.constant 0 : i32
    %12 = arith.cmpi slt, %5, %c0_i32_4 : i32
    %13 = vector.broadcast %12 : i1 to vector<32x1xi1>
    %14 = vector.broadcast %13 : vector<32x1xi1> to vector<32x1xi1>
    %15 = arith.xori %11, %14 : vector<32x1xi1>
    %16 = arith.andi %15, %9 : vector<32x1xi1>
    %17 = vector.broadcast %5 : i32 to vector<32x1xi32>
    %18 = arith.addi %7, %17 : vector<32x1xi32>
    %19 = arith.select %16, %18, %7 : vector<32x1xi1>, vector<32x1xi32>
    %c0_i32_5 = arith.constant 0 : i32
    %20 = vector.broadcast %c0_i32_5 : i32 to vector<32x1xi32>
    %21 = arith.cmpi eq, %19, %20 : vector<32x1xi32>
    %c1 = arith.constant 1 : index
    %c0_6 = arith.constant 0 : index
    %22 = tpu.strided_load %arg5[%c1, %c0_6] {strides = array<i32: 2, 1>} : memref<72x16xf32, #tpu.memory_space<vmem>>, vector<32x16xf32>
    %cst = arith.constant 0.000000e+00 : f32
    %23 = vector.shape_cast %21 : vector<32x1xi1> to vector<32x1xi1>
    %24 = vector.broadcast %23 : vector<32x1xi1> to vector<32x16xi1>
    %25 = vector.broadcast %cst : f32 to vector<32x16xf32>
    %26 = arith.select %24, %25, %22 : vector<32x16xi1>, vector<32x16xf32>
    %c0_7 = arith.constant 0 : index
    %c0_8 = arith.constant 0 : index
    %27 = vector.load %arg2[%c0_7, %c0_8] : memref<640x32xbf16, #tpu.memory_space<vmem>>, vector<16x16xbf16>
    %28 = arith.truncf %26 : vector<32x16xf32> to vector<32x16xbf16>
    %cst_9 = arith.constant dense<0.000000e+00> : vector<32x16xf32>
    %29 = tpu.matmul %28, %27, %cst_9 {dimension_numbers = #tpu.dot_dimension_numbers<[1], [0], [0], [1], [0, 0, 1, 1], [], []>} : vector<32x16xbf16>, vector<16x16xbf16>, vector<32x16xf32> -> vector<32x16xf32>
    %c2_10 = arith.constant 2 : index
    %c0_11 = arith.constant 0 : index
    %30 = tpu.strided_load %arg5[%c2_10, %c0_11] {strides = array<i32: 2, 1>} : memref<72x16xf32, #tpu.memory_space<vmem>>, vector<32x16xf32>
    %c16 = arith.constant 16 : index
    %c0_12 = arith.constant 0 : index
    %31 = vector.load %arg2[%c16, %c0_12] : memref<640x32xbf16, #tpu.memory_space<vmem>>, vector<16x16xbf16>
    %32 = arith.truncf %30 : vector<32x16xf32> to vector<32x16xbf16>
    %cst_13 = arith.constant dense<0.000000e+00> : vector<32x16xf32>
    %33 = tpu.matmul %32, %31, %cst_13 {dimension_numbers = #tpu.dot_dimension_numbers<[1], [0], [0], [1], [0, 0, 1, 1], [], []>} : vector<32x16xbf16>, vector<16x16xbf16>, vector<32x16xf32> -> vector<32x16xf32>
    %34 = arith.addf %29, %33 : vector<32x16xf32>
    %c3 = arith.constant 3 : index
    %c0_14 = arith.constant 0 : index
    %35 = tpu.strided_load %arg5[%c3, %c0_14] {strides = array<i32: 2, 1>} : memref<72x16xf32, #tpu.memory_space<vmem>>, vector<32x16xf32>
    %c32 = arith.constant 32 : index
    %c0_15 = arith.constant 0 : index
    %36 = vector.load %arg2[%c32, %c0_15] : memref<640x32xbf16, #tpu.memory_space<vmem>>, vector<16x16xbf16>
    %37 = arith.truncf %35 : vector<32x16xf32> to vector<32x16xbf16>
    %cst_16 = arith.constant dense<0.000000e+00> : vector<32x16xf32>
    %38 = tpu.matmul %37, %36, %cst_16 {dimension_numbers = #tpu.dot_dimension_numbers<[1], [0], [0], [1], [0, 0, 1, 1], [], []>} : vector<32x16xbf16>, vector<16x16xbf16>, vector<32x16xf32> -> vector<32x16xf32>
    %39 = arith.addf %34, %38 : vector<32x16xf32>
    %c2_17 = arith.constant 2 : index
    %c0_18 = arith.constant 0 : index
    %40 = vector.load %arg5[%c2_17, %c0_18] : memref<72x16xf32, #tpu.memory_space<vmem>>, vector<32x16xf32>
    tpu.vector_store %arg5[%c2_17, %c0_18], %39 {strides = array<i32>} : memref<72x16xf32, #tpu.memory_space<vmem>>, vector<32x16xf32>,
    %41 = tpu.iota {dimensions = array<i32: 0>} : vector<16x1xi32>
    %c16_i32 = arith.constant 16 : i32
    %c0_i32_19 = arith.constant 0 : i32
    %42 = arith.cmpi eq, %c16_i32, %c0_i32_19 : i32
    %c1_i32_20 = arith.constant 1 : i32
    %43 = arith.select %42, %c1_i32_20, %c16_i32 : i32
    %44 = vector.broadcast %43 : i32 to vector<16x1xi32>
    %45 = arith.remsi %41, %44 : vector<16x1xi32>
    %c0_i32_21 = arith.constant 0 : i32
    %46 = vector.broadcast %c0_i32_21 : i32 to vector<16x1xi32>
    %47 = arith.cmpi ne, %45, %46 : vector<16x1xi32>
    %c0_i32_22 = arith.constant 0 : i32
    %48 = vector.broadcast %c0_i32_22 : i32 to vector<16x1xi32>
    %49 = arith.cmpi slt, %45, %48 : vector<16x1xi32>
    %c0_i32_23 = arith.constant 0 : i32
    %50 = arith.cmpi slt, %43, %c0_i32_23 : i32
    %51 = vector.broadcast %50 : i1 to vector<16x1xi1>
    %52 = vector.broadcast %51 : vector<16x1xi1> to vector<16x1xi1>
    %53 = arith.xori %49, %52 : vector<16x1xi1>
    %54 = arith.andi %53, %47 : vector<16x1xi1>
    %55 = vector.broadcast %43 : i32 to vector<16x1xi32>
    %56 = arith.addi %45, %55 : vector<16x1xi32>
    %57 = arith.select %54, %56, %45 : vector<16x1xi1>, vector<16x1xi32>
    %c0_i32_24 = arith.constant 0 : i32
    %58 = vector.broadcast %c0_i32_24 : i32 to vector<16x1xi32>
    %59 = arith.cmpi eq, %57, %58 : vector<16x1xi32>
    %c15_i32 = arith.constant 15 : i32
    %60 = vector.broadcast %c15_i32 : i32 to vector<16x1xi32>
    %61 = arith.cmpi eq, %57, %60 : vector<16x1xi32>
    %c1_25 = arith.constant 1 : index
    %c0_26 = arith.constant 0 : index
    %62 = tpu.strided_load %arg5[%c1_25, %c0_26] {strides = array<i32: 2, 1>} : memref<72x16xf32, #tpu.memory_space<vmem>>, vector<16x16xf32>
    %cst_27 = arith.constant 0.000000e+00 : f32
    %63 = vector.shape_cast %59 : vector<16x1xi1> to vector<16x1xi1>
    %64 = vector.broadcast %63 : vector<16x1xi1> to vector<16x16xi1>
    %65 = vector.broadcast %cst_27 : f32 to vector<16x16xf32>
    %66 = arith.select %64, %65, %62 : vector<16x16xi1>, vector<16x16xf32>
    %c48 = arith.constant 48 : index
    %c0_28 = arith.constant 0 : index
    %67 = vector.load %arg2[%c48, %c0_28] : memref<640x32xbf16, #tpu.memory_space<vmem>>, vector<16x32xbf16>
    %68 = arith.truncf %66 : vector<16x16xf32> to vector<16x16xbf16>
    %cst_29 = arith.constant dense<0.000000e+00> : vector<16x32xf32>
    %69 = tpu.matmul %68, %67, %cst_29 {dimension_numbers = #tpu.dot_dimension_numbers<[1], [0], [0], [1], [0, 0, 1, 1], [], []>} : vector<16x16xbf16>, vector<16x32xbf16>, vector<16x32xf32> -> vector<16x32xf32>
    %c2_30 = arith.constant 2 : index
    %c0_31 = arith.constant 0 : index
    %70 = tpu.strided_load %arg5[%c2_30, %c0_31] {strides = array<i32: 2, 1>} : memref<72x16xf32, #tpu.memory_space<vmem>>, vector<16x16xf32>
    %c64 = arith.constant 64 : index
    %c0_32 = arith.constant 0 : index
    %71 = vector.load %arg2[%c64, %c0_32] : memref<640x32xbf16, #tpu.memory_space<vmem>>, vector<16x32xbf16>
    %72 = arith.truncf %70 : vector<16x16xf32> to vector<16x16xbf16>
    %cst_33 = arith.constant dense<0.000000e+00> : vector<16x32xf32>
    %73 = tpu.matmul %72, %71, %cst_33 {dimension_numbers = #tpu.dot_dimension_numbers<[1], [0], [0], [1], [0, 0, 1, 1], [], []>} : vector<16x16xbf16>, vector<16x32xbf16>, vector<16x32xf32> -> vector<16x32xf32>
    %74 = arith.addf %69, %73 : vector<16x32xf32>
    %c3_34 = arith.constant 3 : index
    %c0_35 = arith.constant 0 : index
    %75 = tpu.strided_load %arg5[%c3_34, %c0_35] {strides = array<i32: 2, 1>} : memref<72x16xf32, #tpu.memory_space<vmem>>, vector<16x16xf32>
    %c80 = arith.constant 80 : index
    %c0_36 = arith.constant 0 : index
    %76 = vector.load %arg2[%c80, %c0_36] : memref<640x32xbf16, #tpu.memory_space<vmem>>, vector<16x32xbf16>
    %77 = arith.truncf %75 : vector<16x16xf32> to vector<16x16xbf16>
    %cst_37 = arith.constant dense<0.000000e+00> : vector<16x32xf32>
    %78 = tpu.matmul %77, %76, %cst_37 {dimension_numbers = #tpu.dot_dimension_numbers<[1], [0], [0], [1], [0, 0, 1, 1], [], []>} : vector<16x16xbf16>, vector<16x32xbf16>, vector<16x32xf32> -> vector<16x32xf32>
    %79 = arith.addf %74, %78 : vector<16x32xf32>
    %c0_38 = arith.constant 0 : index
    %c0_39 = arith.constant 0 : index
    %80 = vector.load %arg3[%c0_38, %c0_39] : memref<16x32xf32, #tpu.memory_space<vmem>>, vector<1x32xf32>
    %81 = vector.broadcast %80 : vector<1x32xf32> to vector<16x32xf32>
    %82 = arith.addf %79, %81 : vector<16x32xf32>
    %83 = vector.extract_strided_slice %82 {offsets = [0, 0], sizes = [16, 16], strides = [1, 1]} : vector<16x32xf32> to vector<16x16xf32>
    %cst_40 = arith.constant 0.000000e+00 : f32
    %84 = vector.broadcast %cst_40 : f32 to vector<16x16xf32>
    %85 = arith.maximumf %83, %84 : vector<16x16xf32>
    %86 = vector.extract_strided_slice %82 {offsets = [0, 16], sizes = [16, 16], strides = [1, 1]} : vector<16x32xf32> to vector<16x16xf32>
    %c2_41 = arith.constant 2 : index
    %c0_42 = arith.constant 0 : index
    %87 = vector.load %arg5[%c2_41, %c0_42] : memref<72x16xf32, #tpu.memory_space<vmem>>, vector<16x16xf32>
    tpu.vector_store %arg5[%c2_41, %c0_42], %85 {strides = array<i32>} : memref<72x16xf32, #tpu.memory_space<vmem>>, vector<16x16xf32>,
    %c1_43 = arith.constant 1 : index
    %c0_44 = arith.constant 0 : index
    %88 = vector.load %arg5[%c1_43, %c0_44] : memref<72x16xf32, #tpu.memory_space<vmem>>, vector<16x16xf32>
    %cst_45 = arith.constant 0.000000e+00 : f32
    %89 = vector.shape_cast %59 : vector<16x1xi1> to vector<16x1xi1>
    %90 = vector.broadcast %89 : vector<16x1xi1> to vector<16x16xi1>
    %91 = vector.broadcast %cst_45 : f32 to vector<16x16xf32>
    %92 = arith.select %90, %91, %88 : vector<16x16xi1>, vector<16x16xf32>
    %c96 = arith.constant 96 : index
    %c0_46 = arith.constant 0 : index
    %93 = vector.load %arg2[%c96, %c0_46] : memref<640x32xbf16, #tpu.memory_space<vmem>>, vector<16x16xbf16>
    %94 = arith.truncf %92 : vector<16x16xf32> to vector<16x16xbf16>
    %cst_47 = arith.constant dense<0.000000e+00> : vector<16x16xf32>
    %95 = tpu.matmul %94, %93, %cst_47 {dimension_numbers = #tpu.dot_dimension_numbers<[1], [0], [0], [1], [0, 0, 1, 1], [], []>} : vector<16x16xbf16>, vector<16x16xbf16>, vector<16x16xf32> -> vector<16x16xf32>
    %c2_48 = arith.constant 2 : index
    %c0_49 = arith.constant 0 : index
    %96 = vector.load %arg5[%c2_48, %c0_49] : memref<72x16xf32, #tpu.memory_space<vmem>>, vector<16x16xf32>
    %c112 = arith.constant 112 : index
    %c0_50 = arith.constant 0 : index
    %97 = vector.load %arg2[%c112, %c0_50] : memref<640x32xbf16, #tpu.memory_space<vmem>>, vector<16x16xbf16>
    %98 = arith.truncf %96 : vector<16x16xf32> to vector<16x16xbf16>
    %cst_51 = arith.constant dense<0.000000e+00> : vector<16x16xf32>
    %99 = tpu.matmul %98, %97, %cst_51 {dimension_numbers = #tpu.dot_dimension_numbers<[1], [0], [0], [1], [0, 0, 1, 1], [], []>} : vector<16x16xbf16>, vector<16x16xbf16>, vector<16x16xf32> -> vector<16x16xf32>
    %100 = arith.addf %95, %99 : vector<16x16xf32>
    %c3_52 = arith.constant 3 : index
    %c0_53 = arith.constant 0 : index
    %101 = vector.load %arg5[%c3_52, %c0_53] : memref<72x16xf32, #tpu.memory_space<vmem>>, vector<16x16xf32>
    %cst_54 = arith.constant 0.000000e+00 : f32
    %102 = vector.shape_cast %61 : vector<16x1xi1> to vector<16x1xi1>
    %103 = vector.broadcast %102 : vector<16x1xi1> to vector<16x16xi1>
    %104 = vector.broadcast %cst_54 : f32 to vector<16x16xf32>
    %105 = arith.select %103, %104, %101 : vector<16x16xi1>, vector<16x16xf32>
    %c128 = arith.constant 128 : index
    %c0_55 = arith.constant 0 : index
    %106 = vector.load %arg2[%c128, %c0_55] : memref<640x32xbf16, #tpu.memory_space<vmem>>, vector<16x16xbf16>
    %107 = arith.truncf %105 : vector<16x16xf32> to vector<16x16xbf16>
    %cst_56 = arith.constant dense<0.000000e+00> : vector<16x16xf32>
    %108 = tpu.matmul %107, %106, %cst_56 {dimension_numbers = #tpu.dot_dimension_numbers<[1], [0], [0], [1], [0, 0, 1, 1], [], []>} : vector<16x16xbf16>, vector<16x16xbf16>, vector<16x16xf32> -> vector<16x16xf32>
    %109 = arith.addf %100, %108 : vector<16x16xf32>
    %c1_57 = arith.constant 1 : index
    %c0_58 = arith.constant 0 : index
    %110 = vector.load %arg3[%c1_57, %c0_58] : memref<16x32xf32, #tpu.memory_space<vmem>>, vector<1x16xf32>
    %111 = vector.broadcast %110 : vector<1x16xf32> to vector<16x16xf32>
    %112 = arith.addf %109, %111 : vector<16x16xf32>
    %113 = arith.addf %112, %86 : vector<16x16xf32>
    %cst_59 = arith.constant 0.000000e+00 : f32
    %114 = vector.broadcast %cst_59 : f32 to vector<16x16xf32>
    %115 = arith.maximumf %113, %114 : vector<16x16xf32>
    %c2_60 = arith.constant 2 : index
    %c0_61 = arith.constant 0 : index
    %116 = vector.load %arg5[%c2_60, %c0_61] : memref<72x16xf32, #tpu.memory_space<vmem>>, vector<16x16xf32>
    tpu.vector_store %arg5[%c2_60, %c0_61], %115 {strides = array<i32>} : memref<72x16xf32, #tpu.memory_space<vmem>>, vector<16x16xf32>,
    %c1_62 = arith.constant 1 : index
    %c0_63 = arith.constant 0 : index
    %117 = vector.load %arg5[%c1_62, %c0_63] : memref<72x16xf32, #tpu.memory_space<vmem>>, vector<16x16xf32>
    %cst_64 = arith.constant 0.000000e+00 : f32
    %118 = vector.shape_cast %59 : vector<16x1xi1> to vector<16x1xi1>
    %119 = vector.broadcast %118 : vector<16x1xi1> to vector<16x16xi1>
    %120 = vector.broadcast %cst_64 : f32 to vector<16x16xf32>
    %121 = arith.select %119, %120, %117 : vector<16x16xi1>, vector<16x16xf32>
    %c144 = arith.constant 144 : index
    %c0_65 = arith.constant 0 : index
    %122 = vector.load %arg2[%c144, %c0_65] : memref<640x32xbf16, #tpu.memory_space<vmem>>, vector<16x16xbf16>
    %123 = arith.truncf %121 : vector<16x16xf32> to vector<16x16xbf16>
    %cst_66 = arith.constant dense<0.000000e+00> : vector<16x16xf32>
    %124 = tpu.matmul %123, %122, %cst_66 {dimension_numbers = #tpu.dot_dimension_numbers<[1], [0], [0], [1], [0, 0, 1, 1], [], []>} : vector<16x16xbf16>, vector<16x16xbf16>, vector<16x16xf32> -> vector<16x16xf32>
    %c2_67 = arith.constant 2 : index
    %c0_68 = arith.constant 0 : index
    %125 = vector.load %arg5[%c2_67, %c0_68] : memref<72x16xf32, #tpu.memory_space<vmem>>, vector<16x16xf32>
    %c160 = arith.constant 160 : index
    %c0_69 = arith.constant 0 : index
    %126 = vector.load %arg2[%c160, %c0_69] : memref<640x32xbf16, #tpu.memory_space<vmem>>, vector<16x16xbf16>
    %127 = arith.truncf %125 : vector<16x16xf32> to vector<16x16xbf16>
    %cst_70 = arith.constant dense<0.000000e+00> : vector<16x16xf32>
    %128 = tpu.matmul %127, %126, %cst_70 {dimension_numbers = #tpu.dot_dimension_numbers<[1], [0], [0], [1], [0, 0, 1, 1], [], []>} : vector<16x16xbf16>, vector<16x16xbf16>, vector<16x16xf32> -> vector<16x16xf32>
    %129 = arith.addf %124, %128 : vector<16x16xf32>
    %c3_71 = arith.constant 3 : index
    %c0_72 = arith.constant 0 : index
    %130 = vector.load %arg5[%c3_71, %c0_72] : memref<72x16xf32, #tpu.memory_space<vmem>>, vector<16x16xf32>
    %cst_73 = arith.constant 0.000000e+00 : f32
    %131 = vector.shape_cast %61 : vector<16x1xi1> to vector<16x1xi1>
    %132 = vector.broadcast %131 : vector<16x1xi1> to vector<16x16xi1>
    %133 = vector.broadcast %cst_73 : f32 to vector<16x16xf32>
    %134 = arith.select %132, %133, %130 : vector<16x16xi1>, vector<16x16xf32>
    %c176 = arith.constant 176 : index
    %c0_74 = arith.constant 0 : index
    %135 = vector.load %arg2[%c176, %c0_74] : memref<640x32xbf16, #tpu.memory_space<vmem>>, vector<16x16xbf16>
    %136 = arith.truncf %134 : vector<16x16xf32> to vector<16x16xbf16>
    %cst_75 = arith.constant dense<0.000000e+00> : vector<16x16xf32>
    %137 = tpu.matmul %136, %135, %cst_75 {dimension_numbers = #tpu.dot_dimension_numbers<[1], [0], [0], [1], [0, 0, 1, 1], [], []>} : vector<16x16xbf16>, vector<16x16xbf16>, vector<16x16xf32> -> vector<16x16xf32>
    %138 = arith.addf %129, %137 : vector<16x16xf32>
    %c2_76 = arith.constant 2 : index
    %c0_77 = arith.constant 0 : index
    %139 = vector.load %arg3[%c2_76, %c0_77] : memref<16x32xf32, #tpu.memory_space<vmem>>, vector<1x16xf32>
    %140 = vector.broadcast %139 : vector<1x16xf32> to vector<16x16xf32>
    %141 = arith.addf %138, %140 : vector<16x16xf32>
    %cst_78 = arith.constant 0.000000e+00 : f32
    %142 = vector.broadcast %cst_78 : f32 to vector<16x16xf32>
    %143 = arith.maximumf %141, %142 : vector<16x16xf32>
    %c2_79 = arith.constant 2 : index
    %c0_80 = arith.constant 0 : index
    %144 = vector.load %arg5[%c2_79, %c0_80] : memref<72x16xf32, #tpu.memory_space<vmem>>, vector<16x16xf32>
    tpu.vector_store %arg5[%c2_79, %c0_80], %143 {strides = array<i32>} : memref<72x16xf32, #tpu.memory_space<vmem>>, vector<16x16xf32>,
    %c1_81 = arith.constant 1 : index
    %c0_82 = arith.constant 0 : index
    %145 = vector.load %arg5[%c1_81, %c0_82] : memref<72x16xf32, #tpu.memory_space<vmem>>, vector<16x16xf32>
    %cst_83 = arith.constant 0.000000e+00 : f32
    %146 = vector.shape_cast %59 : vector<16x1xi1> to vector<16x1xi1>
    %147 = vector.broadcast %146 : vector<16x1xi1> to vector<16x16xi1>
    %148 = vector.broadcast %cst_83 : f32 to vector<16x16xf32>
    %149 = arith.select %147, %148, %145 : vector<16x16xi1>, vector<16x16xf32>
    %c192 = arith.constant 192 : index
    %c0_84 = arith.constant 0 : index
    %150 = vector.load %arg2[%c192, %c0_84] : memref<640x32xbf16, #tpu.memory_space<vmem>>, vector<16x16xbf16>
    %151 = arith.truncf %149 : vector<16x16xf32> to vector<16x16xbf16>
    %cst_85 = arith.constant dense<0.000000e+00> : vector<16x16xf32>
    %152 = tpu.matmul %151, %150, %cst_85 {dimension_numbers = #tpu.dot_dimension_numbers<[1], [0], [0], [1], [0, 0, 1, 1], [], []>} : vector<16x16xbf16>, vector<16x16xbf16>, vector<16x16xf32> -> vector<16x16xf32>
    %c2_86 = arith.constant 2 : index
    %c0_87 = arith.constant 0 : index
    %153 = vector.load %arg5[%c2_86, %c0_87] : memref<72x16xf32, #tpu.memory_space<vmem>>, vector<16x16xf32>
    %c208 = arith.constant 208 : index
    %c0_88 = arith.constant 0 : index
    %154 = vector.load %arg2[%c208, %c0_88] : memref<640x32xbf16, #tpu.memory_space<vmem>>, vector<16x16xbf16>
    %155 = arith.truncf %153 : vector<16x16xf32> to vector<16x16xbf16>
    %cst_89 = arith.constant dense<0.000000e+00> : vector<16x16xf32>
    %156 = tpu.matmul %155, %154, %cst_89 {dimension_numbers = #tpu.dot_dimension_numbers<[1], [0], [0], [1], [0, 0, 1, 1], [], []>} : vector<16x16xbf16>, vector<16x16xbf16>, vector<16x16xf32> -> vector<16x16xf32>
    %157 = arith.addf %152, %156 : vector<16x16xf32>
    %c3_90 = arith.constant 3 : index
    %c0_91 = arith.constant 0 : index
    %158 = vector.load %arg5[%c3_90, %c0_91] : memref<72x16xf32, #tpu.memory_space<vmem>>, vector<16x16xf32>
    %cst_92 = arith.constant 0.000000e+00 : f32
    %159 = vector.shape_cast %61 : vector<16x1xi1> to vector<16x1xi1>
    %160 = vector.broadcast %159 : vector<16x1xi1> to vector<16x16xi1>
    %161 = vector.broadcast %cst_92 : f32 to vector<16x16xf32>
    %162 = arith.select %160, %161, %158 : vector<16x16xi1>, vector<16x16xf32>
    %c224 = arith.constant 224 : index
    %c0_93 = arith.constant 0 : index
    %163 = vector.load %arg2[%c224, %c0_93] : memref<640x32xbf16, #tpu.memory_space<vmem>>, vector<16x16xbf16>
    %164 = arith.truncf %162 : vector<16x16xf32> to vector<16x16xbf16>
    %cst_94 = arith.constant dense<0.000000e+00> : vector<16x16xf32>
    %165 = tpu.matmul %164, %163, %cst_94 {dimension_numbers = #tpu.dot_dimension_numbers<[1], [0], [0], [1], [0, 0, 1, 1], [], []>} : vector<16x16xbf16>, vector<16x16xbf16>, vector<16x16xf32> -> vector<16x16xf32>
    %166 = arith.addf %157, %165 : vector<16x16xf32>
    %c3_95 = arith.constant 3 : index
    %c0_96 = arith.constant 0 : index
    %167 = vector.load %arg3[%c3_95, %c0_96] : memref<16x32xf32, #tpu.memory_space<vmem>>, vector<1x16xf32>
    %168 = vector.broadcast %167 : vector<1x16xf32> to vector<16x16xf32>
    %169 = arith.addf %166, %168 : vector<16x16xf32>
    %170 = arith.addf %169, %115 : vector<16x16xf32>
    %cst_97 = arith.constant 0.000000e+00 : f32
    %171 = vector.broadcast %cst_97 : f32 to vector<16x16xf32>
    %172 = arith.maximumf %170, %171 : vector<16x16xf32>
    %c2_98 = arith.constant 2 : index
    %c0_99 = arith.constant 0 : index
    %173 = vector.load %arg5[%c2_98, %c0_99] : memref<72x16xf32, #tpu.memory_space<vmem>>, vector<16x16xf32>
    tpu.vector_store %arg5[%c2_98, %c0_99], %172 {strides = array<i32>} : memref<72x16xf32, #tpu.memory_space<vmem>>, vector<16x16xf32>,
    %174 = tpu.iota {dimensions = array<i32: 0>} : vector<8x1xi32>
    %c8_i32 = arith.constant 8 : i32
    %c0_i32_100 = arith.constant 0 : i32
    %175 = arith.cmpi eq, %c8_i32, %c0_i32_100 : i32
    %c1_i32_101 = arith.constant 1 : i32
    %176 = arith.select %175, %c1_i32_101, %c8_i32 : i32
    %177 = vector.broadcast %176 : i32 to vector<8x1xi32>
    %178 = arith.remsi %174, %177 : vector<8x1xi32>
    %c0_i32_102 = arith.constant 0 : i32
    %179 = vector.broadcast %c0_i32_102 : i32 to vector<8x1xi32>
    %180 = arith.cmpi ne, %178, %179 : vector<8x1xi32>
    %c0_i32_103 = arith.constant 0 : i32
    %181 = vector.broadcast %c0_i32_103 : i32 to vector<8x1xi32>
    %182 = arith.cmpi slt, %178, %181 : vector<8x1xi32>
    %c0_i32_104 = arith.constant 0 : i32
    %183 = arith.cmpi slt, %176, %c0_i32_104 : i32
    %184 = vector.broadcast %183 : i1 to vector<8x1xi1>
    %185 = vector.broadcast %184 : vector<8x1xi1> to vector<8x1xi1>
    %186 = arith.xori %182, %185 : vector<8x1xi1>
    %187 = arith.andi %186, %180 : vector<8x1xi1>
    %188 = vector.broadcast %176 : i32 to vector<8x1xi32>
    %189 = arith.addi %178, %188 : vector<8x1xi32>
    %190 = arith.select %187, %189, %178 : vector<8x1xi1>, vector<8x1xi32>
    %c0_i32_105 = arith.constant 0 : i32
    %191 = vector.broadcast %c0_i32_105 : i32 to vector<8x1xi32>
    %192 = arith.cmpi eq, %190, %191 : vector<8x1xi32>
    %c7_i32 = arith.constant 7 : i32
    %193 = vector.broadcast %c7_i32 : i32 to vector<8x1xi32>
    %194 = arith.cmpi eq, %190, %193 : vector<8x1xi32>
    %c1_106 = arith.constant 1 : index
    %c0_107 = arith.constant 0 : index
    %195 = tpu.strided_load %arg5[%c1_106, %c0_107] {strides = array<i32: 2, 1>} : memref<72x16xf32, #tpu.memory_space<vmem>>, vector<8x16xf32>
    %cst_108 = arith.constant 0.000000e+00 : f32
    %196 = vector.shape_cast %192 : vector<8x1xi1> to vector<8x1xi1>
    %197 = vector.broadcast %196 : vector<8x1xi1> to vector<8x16xi1>
    %198 = vector.broadcast %cst_108 : f32 to vector<8x16xf32>
    %199 = arith.select %197, %198, %195 : vector<8x16xi1>, vector<8x16xf32>
    %c240 = arith.constant 240 : index
    %c0_109 = arith.constant 0 : index
    %200 = vector.load %arg2[%c240, %c0_109] : memref<640x32xbf16, #tpu.memory_space<vmem>>, vector<16x32xbf16>
    %201 = arith.truncf %199 : vector<8x16xf32> to vector<8x16xbf16>
    %cst_110 = arith.constant dense<0.000000e+00> : vector<8x32xf32>
    %202 = tpu.matmul %201, %200, %cst_110 {dimension_numbers = #tpu.dot_dimension_numbers<[1], [0], [0], [1], [0, 0, 1, 1], [], []>} : vector<8x16xbf16>, vector<16x32xbf16>, vector<8x32xf32> -> vector<8x32xf32>
    %c2_111 = arith.constant 2 : index
    %c0_112 = arith.constant 0 : index
    %203 = tpu.strided_load %arg5[%c2_111, %c0_112] {strides = array<i32: 2, 1>} : memref<72x16xf32, #tpu.memory_space<vmem>>, vector<8x16xf32>
    %c256 = arith.constant 256 : index
    %c0_113 = arith.constant 0 : index
    %204 = vector.load %arg2[%c256, %c0_113] : memref<640x32xbf16, #tpu.memory_space<vmem>>, vector<16x32xbf16>
    %205 = arith.truncf %203 : vector<8x16xf32> to vector<8x16xbf16>
    %cst_114 = arith.constant dense<0.000000e+00> : vector<8x32xf32>
    %206 = tpu.matmul %205, %204, %cst_114 {dimension_numbers = #tpu.dot_dimension_numbers<[1], [0], [0], [1], [0, 0, 1, 1], [], []>} : vector<8x16xbf16>, vector<16x32xbf16>, vector<8x32xf32> -> vector<8x32xf32>
    %207 = arith.addf %202, %206 : vector<8x32xf32>
    %c3_115 = arith.constant 3 : index
    %c0_116 = arith.constant 0 : index
    %208 = tpu.strided_load %arg5[%c3_115, %c0_116] {strides = array<i32: 2, 1>} : memref<72x16xf32, #tpu.memory_space<vmem>>, vector<8x16xf32>
    %c272 = arith.constant 272 : index
    %c0_117 = arith.constant 0 : index
    %209 = vector.load %arg2[%c272, %c0_117] : memref<640x32xbf16, #tpu.memory_space<vmem>>, vector<16x32xbf16>
    %210 = arith.truncf %208 : vector<8x16xf32> to vector<8x16xbf16>
    %cst_118 = arith.constant dense<0.000000e+00> : vector<8x32xf32>
    %211 = tpu.matmul %210, %209, %cst_118 {dimension_numbers = #tpu.dot_dimension_numbers<[1], [0], [0], [1], [0, 0, 1, 1], [], []>} : vector<8x16xbf16>, vector<16x32xbf16>, vector<8x32xf32> -> vector<8x32xf32>
    %212 = arith.addf %207, %211 : vector<8x32xf32>
    %c4 = arith.constant 4 : index
    %c0_119 = arith.constant 0 : index
    %213 = vector.load %arg3[%c4, %c0_119] : memref<16x32xf32, #tpu.memory_space<vmem>>, vector<1x32xf32>
    %214 = vector.broadcast %213 : vector<1x32xf32> to vector<8x32xf32>
    %215 = arith.addf %212, %214 : vector<8x32xf32>
    %216 = vector.extract_strided_slice %215 {offsets = [0, 0], sizes = [8, 16], strides = [1, 1]} : vector<8x32xf32> to vector<8x16xf32>
    %cst_120 = arith.constant 0.000000e+00 : f32
    %217 = vector.broadcast %cst_120 : f32 to vector<8x16xf32>
    %218 = arith.maximumf %216, %217 : vector<8x16xf32>
    %219 = vector.extract_strided_slice %215 {offsets = [0, 16], sizes = [8, 16], strides = [1, 1]} : vector<8x32xf32> to vector<8x16xf32>
    %c2_121 = arith.constant 2 : index
    %c0_122 = arith.constant 0 : index
    %220 = vector.load %arg5[%c2_121, %c0_122] : memref<72x16xf32, #tpu.memory_space<vmem>>, vector<8x16xf32>
    tpu.vector_store %arg5[%c2_121, %c0_122], %218 {strides = array<i32>} : memref<72x16xf32, #tpu.memory_space<vmem>>, vector<8x16xf32>,
    %c1_123 = arith.constant 1 : index
    %c0_124 = arith.constant 0 : index
    %221 = vector.load %arg5[%c1_123, %c0_124] : memref<72x16xf32, #tpu.memory_space<vmem>>, vector<8x16xf32>
    %cst_125 = arith.constant 0.000000e+00 : f32
    %222 = vector.shape_cast %192 : vector<8x1xi1> to vector<8x1xi1>
    %223 = vector.broadcast %222 : vector<8x1xi1> to vector<8x16xi1>
    %224 = vector.broadcast %cst_125 : f32 to vector<8x16xf32>
    %225 = arith.select %223, %224, %221 : vector<8x16xi1>, vector<8x16xf32>
    %c288 = arith.constant 288 : index
    %c0_126 = arith.constant 0 : index
    %226 = vector.load %arg2[%c288, %c0_126] : memref<640x32xbf16, #tpu.memory_space<vmem>>, vector<16x16xbf16>
    %227 = arith.truncf %225 : vector<8x16xf32> to vector<8x16xbf16>
    %cst_127 = arith.constant dense<0.000000e+00> : vector<8x16xf32>
    %228 = tpu.matmul %227, %226, %cst_127 {dimension_numbers = #tpu.dot_dimension_numbers<[1], [0], [0], [1], [0, 0, 1, 1], [], []>} : vector<8x16xbf16>, vector<16x16xbf16>, vector<8x16xf32> -> vector<8x16xf32>
    %c2_128 = arith.constant 2 : index
    %c0_129 = arith.constant 0 : index
    %229 = vector.load %arg5[%c2_128, %c0_129] : memref<72x16xf32, #tpu.memory_space<vmem>>, vector<8x16xf32>
    %c304 = arith.constant 304 : index
    %c0_130 = arith.constant 0 : index
    %230 = vector.load %arg2[%c304, %c0_130] : memref<640x32xbf16, #tpu.memory_space<vmem>>, vector<16x16xbf16>
    %231 = arith.truncf %229 : vector<8x16xf32> to vector<8x16xbf16>
    %cst_131 = arith.constant dense<0.000000e+00> : vector<8x16xf32>
    %232 = tpu.matmul %231, %230, %cst_131 {dimension_numbers = #tpu.dot_dimension_numbers<[1], [0], [0], [1], [0, 0, 1, 1], [], []>} : vector<8x16xbf16>, vector<16x16xbf16>, vector<8x16xf32> -> vector<8x16xf32>
    %233 = arith.addf %228, %232 : vector<8x16xf32>
    %c3_132 = arith.constant 3 : index
    %c0_133 = arith.constant 0 : index
    %234 = vector.load %arg5[%c3_132, %c0_133] : memref<72x16xf32, #tpu.memory_space<vmem>>, vector<8x16xf32>
    %cst_134 = arith.constant 0.000000e+00 : f32
    %235 = vector.shape_cast %194 : vector<8x1xi1> to vector<8x1xi1>
    %236 = vector.broadcast %235 : vector<8x1xi1> to vector<8x16xi1>
    %237 = vector.broadcast %cst_134 : f32 to vector<8x16xf32>
    %238 = arith.select %236, %237, %234 : vector<8x16xi1>, vector<8x16xf32>
    %c320 = arith.constant 320 : index
    %c0_135 = arith.constant 0 : index
    %239 = vector.load %arg2[%c320, %c0_135] : memref<640x32xbf16, #tpu.memory_space<vmem>>, vector<16x16xbf16>
    %240 = arith.truncf %238 : vector<8x16xf32> to vector<8x16xbf16>
    %cst_136 = arith.constant dense<0.000000e+00> : vector<8x16xf32>
    %241 = tpu.matmul %240, %239, %cst_136 {dimension_numbers = #tpu.dot_dimension_numbers<[1], [0], [0], [1], [0, 0, 1, 1], [], []>} : vector<8x16xbf16>, vector<16x16xbf16>, vector<8x16xf32> -> vector<8x16xf32>
    %242 = arith.addf %233, %241 : vector<8x16xf32>
    %c5 = arith.constant 5 : index
    %c0_137 = arith.constant 0 : index
    %243 = vector.load %arg3[%c5, %c0_137] : memref<16x32xf32, #tpu.memory_space<vmem>>, vector<1x16xf32>
    %244 = vector.broadcast %243 : vector<1x16xf32> to vector<8x16xf32>
    %245 = arith.addf %242, %244 : vector<8x16xf32>
    %246 = arith.addf %245, %219 : vector<8x16xf32>
    %cst_138 = arith.constant 0.000000e+00 : f32
    %247 = vector.broadcast %cst_138 : f32 to vector<8x16xf32>
    %248 = arith.maximumf %246, %247 : vector<8x16xf32>
    %c2_139 = arith.constant 2 : index
    %c0_140 = arith.constant 0 : index
    %249 = vector.load %arg5[%c2_139, %c0_140] : memref<72x16xf32, #tpu.memory_space<vmem>>, vector<8x16xf32>
    tpu.vector_store %arg5[%c2_139, %c0_140], %248 {strides = array<i32>} : memref<72x16xf32, #tpu.memory_space<vmem>>, vector<8x16xf32>,
    %c1_141 = arith.constant 1 : index
    %c0_142 = arith.constant 0 : index
    %250 = vector.load %arg5[%c1_141, %c0_142] : memref<72x16xf32, #tpu.memory_space<vmem>>, vector<8x16xf32>
    %cst_143 = arith.constant 0.000000e+00 : f32
    %251 = vector.shape_cast %192 : vector<8x1xi1> to vector<8x1xi1>
    %252 = vector.broadcast %251 : vector<8x1xi1> to vector<8x16xi1>
    %253 = vector.broadcast %cst_143 : f32 to vector<8x16xf32>
    %254 = arith.select %252, %253, %250 : vector<8x16xi1>, vector<8x16xf32>
    %c336 = arith.constant 336 : index
    %c0_144 = arith.constant 0 : index
    %255 = vector.load %arg2[%c336, %c0_144] : memref<640x32xbf16, #tpu.memory_space<vmem>>, vector<16x16xbf16>
    %256 = arith.truncf %254 : vector<8x16xf32> to vector<8x16xbf16>
    %cst_145 = arith.constant dense<0.000000e+00> : vector<8x16xf32>
    %257 = tpu.matmul %256, %255, %cst_145 {dimension_numbers = #tpu.dot_dimension_numbers<[1], [0], [0], [1], [0, 0, 1, 1], [], []>} : vector<8x16xbf16>, vector<16x16xbf16>, vector<8x16xf32> -> vector<8x16xf32>
    %c2_146 = arith.constant 2 : index
    %c0_147 = arith.constant 0 : index
    %258 = vector.load %arg5[%c2_146, %c0_147] : memref<72x16xf32, #tpu.memory_space<vmem>>, vector<8x16xf32>
    %c352 = arith.constant 352 : index
    %c0_148 = arith.constant 0 : index
    %259 = vector.load %arg2[%c352, %c0_148] : memref<640x32xbf16, #tpu.memory_space<vmem>>, vector<16x16xbf16>
    %260 = arith.truncf %258 : vector<8x16xf32> to vector<8x16xbf16>
    %cst_149 = arith.constant dense<0.000000e+00> : vector<8x16xf32>
    %261 = tpu.matmul %260, %259, %cst_149 {dimension_numbers = #tpu.dot_dimension_numbers<[1], [0], [0], [1], [0, 0, 1, 1], [], []>} : vector<8x16xbf16>, vector<16x16xbf16>, vector<8x16xf32> -> vector<8x16xf32>
    %262 = arith.addf %257, %261 : vector<8x16xf32>
    %c3_150 = arith.constant 3 : index
    %c0_151 = arith.constant 0 : index
    %263 = vector.load %arg5[%c3_150, %c0_151] : memref<72x16xf32, #tpu.memory_space<vmem>>, vector<8x16xf32>
    %cst_152 = arith.constant 0.000000e+00 : f32
    %264 = vector.shape_cast %194 : vector<8x1xi1> to vector<8x1xi1>
    %265 = vector.broadcast %264 : vector<8x1xi1> to vector<8x16xi1>
    %266 = vector.broadcast %cst_152 : f32 to vector<8x16xf32>
    %267 = arith.select %265, %266, %263 : vector<8x16xi1>, vector<8x16xf32>
    %c368 = arith.constant 368 : index
    %c0_153 = arith.constant 0 : index
    %268 = vector.load %arg2[%c368, %c0_153] : memref<640x32xbf16, #tpu.memory_space<vmem>>, vector<16x16xbf16>
    %269 = arith.truncf %267 : vector<8x16xf32> to vector<8x16xbf16>
    %cst_154 = arith.constant dense<0.000000e+00> : vector<8x16xf32>
    %270 = tpu.matmul %269, %268, %cst_154 {dimension_numbers = #tpu.dot_dimension_numbers<[1], [0], [0], [1], [0, 0, 1, 1], [], []>} : vector<8x16xbf16>, vector<16x16xbf16>, vector<8x16xf32> -> vector<8x16xf32>
    %271 = arith.addf %262, %270 : vector<8x16xf32>
    %c6 = arith.constant 6 : index
    %c0_155 = arith.constant 0 : index
    %272 = vector.load %arg3[%c6, %c0_155] : memref<16x32xf32, #tpu.memory_space<vmem>>, vector<1x16xf32>
    %273 = vector.broadcast %272 : vector<1x16xf32> to vector<8x16xf32>
    %274 = arith.addf %271, %273 : vector<8x16xf32>
    %cst_156 = arith.constant 0.000000e+00 : f32
    %275 = vector.broadcast %cst_156 : f32 to vector<8x16xf32>
    %276 = arith.maximumf %274, %275 : vector<8x16xf32>
    %c2_157 = arith.constant 2 : index
    %c0_158 = arith.constant 0 : index
    %277 = vector.load %arg5[%c2_157, %c0_158] : memref<72x16xf32, #tpu.memory_space<vmem>>, vector<8x16xf32>
    tpu.vector_store %arg5[%c2_157, %c0_158], %276 {strides = array<i32>} : memref<72x16xf32, #tpu.memory_space<vmem>>, vector<8x16xf32>,
    %c1_159 = arith.constant 1 : index
    %c0_160 = arith.constant 0 : index
    %278 = vector.load %arg5[%c1_159, %c0_160] : memref<72x16xf32, #tpu.memory_space<vmem>>, vector<8x16xf32>
    %cst_161 = arith.constant 0.000000e+00 : f32
    %279 = vector.shape_cast %192 : vector<8x1xi1> to vector<8x1xi1>
    %280 = vector.broadcast %279 : vector<8x1xi1> to vector<8x16xi1>
    %281 = vector.broadcast %cst_161 : f32 to vector<8x16xf32>
    %282 = arith.select %280, %281, %278 : vector<8x16xi1>, vector<8x16xf32>
    %c384 = arith.constant 384 : index
    %c0_162 = arith.constant 0 : index
    %283 = vector.load %arg2[%c384, %c0_162] : memref<640x32xbf16, #tpu.memory_space<vmem>>, vector<16x16xbf16>
    %284 = arith.truncf %282 : vector<8x16xf32> to vector<8x16xbf16>
    %cst_163 = arith.constant dense<0.000000e+00> : vector<8x16xf32>
    %285 = tpu.matmul %284, %283, %cst_163 {dimension_numbers = #tpu.dot_dimension_numbers<[1], [0], [0], [1], [0, 0, 1, 1], [], []>} : vector<8x16xbf16>, vector<16x16xbf16>, vector<8x16xf32> -> vector<8x16xf32>
    %c2_164 = arith.constant 2 : index
    %c0_165 = arith.constant 0 : index
    %286 = vector.load %arg5[%c2_164, %c0_165] : memref<72x16xf32, #tpu.memory_space<vmem>>, vector<8x16xf32>
    %c400 = arith.constant 400 : index
    %c0_166 = arith.constant 0 : index
    %287 = vector.load %arg2[%c400, %c0_166] : memref<640x32xbf16, #tpu.memory_space<vmem>>, vector<16x16xbf16>
    %288 = arith.truncf %286 : vector<8x16xf32> to vector<8x16xbf16>
    %cst_167 = arith.constant dense<0.000000e+00> : vector<8x16xf32>
    %289 = tpu.matmul %288, %287, %cst_167 {dimension_numbers = #tpu.dot_dimension_numbers<[1], [0], [0], [1], [0, 0, 1, 1], [], []>} : vector<8x16xbf16>, vector<16x16xbf16>, vector<8x16xf32> -> vector<8x16xf32>
    %290 = arith.addf %285, %289 : vector<8x16xf32>
    %c3_168 = arith.constant 3 : index
    %c0_169 = arith.constant 0 : index
    %291 = vector.load %arg5[%c3_168, %c0_169] : memref<72x16xf32, #tpu.memory_space<vmem>>, vector<8x16xf32>
    %cst_170 = arith.constant 0.000000e+00 : f32
    %292 = vector.shape_cast %194 : vector<8x1xi1> to vector<8x1xi1>
    %293 = vector.broadcast %292 : vector<8x1xi1> to vector<8x16xi1>
    %294 = vector.broadcast %cst_170 : f32 to vector<8x16xf32>
    %295 = arith.select %293, %294, %291 : vector<8x16xi1>, vector<8x16xf32>
    %c416 = arith.constant 416 : index
    %c0_171 = arith.constant 0 : index
    %296 = vector.load %arg2[%c416, %c0_171] : memref<640x32xbf16, #tpu.memory_space<vmem>>, vector<16x16xbf16>
    %297 = arith.truncf %295 : vector<8x16xf32> to vector<8x16xbf16>
    %cst_172 = arith.constant dense<0.000000e+00> : vector<8x16xf32>
    %298 = tpu.matmul %297, %296, %cst_172 {dimension_numbers = #tpu.dot_dimension_numbers<[1], [0], [0], [1], [0, 0, 1, 1], [], []>} : vector<8x16xbf16>, vector<16x16xbf16>, vector<8x16xf32> -> vector<8x16xf32>
    %299 = arith.addf %290, %298 : vector<8x16xf32>
    %c7 = arith.constant 7 : index
    %c0_173 = arith.constant 0 : index
    %300 = vector.load %arg3[%c7, %c0_173] : memref<16x32xf32, #tpu.memory_space<vmem>>, vector<1x16xf32>
    %301 = vector.broadcast %300 : vector<1x16xf32> to vector<8x16xf32>
    %302 = arith.addf %299, %301 : vector<8x16xf32>
    %303 = arith.addf %302, %248 : vector<8x16xf32>
    %cst_174 = arith.constant 0.000000e+00 : f32
    %304 = vector.broadcast %cst_174 : f32 to vector<8x16xf32>
    %305 = arith.maximumf %303, %304 : vector<8x16xf32>
    %c2_175 = arith.constant 2 : index
    %c0_176 = arith.constant 0 : index
    %306 = vector.load %arg5[%c2_175, %c0_176] : memref<72x16xf32, #tpu.memory_space<vmem>>, vector<8x16xf32>
    tpu.vector_store %arg5[%c2_175, %c0_176], %305 {strides = array<i32>} : memref<72x16xf32, #tpu.memory_space<vmem>>, vector<8x16xf32>,
    %307 = tpu.iota {dimensions = array<i32: 0>} : vector<4x1xi32>
    %c4_i32 = arith.constant 4 : i32
    %c0_i32_177 = arith.constant 0 : i32
    %308 = arith.cmpi eq, %c4_i32, %c0_i32_177 : i32
    %c1_i32_178 = arith.constant 1 : i32
    %309 = arith.select %308, %c1_i32_178, %c4_i32 : i32
    %310 = vector.broadcast %309 : i32 to vector<4x1xi32>
    %311 = arith.remsi %307, %310 : vector<4x1xi32>
    %c0_i32_179 = arith.constant 0 : i32
    %312 = vector.broadcast %c0_i32_179 : i32 to vector<4x1xi32>
    %313 = arith.cmpi ne, %311, %312 : vector<4x1xi32>
    %c0_i32_180 = arith.constant 0 : i32
    %314 = vector.broadcast %c0_i32_180 : i32 to vector<4x1xi32>
    %315 = arith.cmpi slt, %311, %314 : vector<4x1xi32>
    %c0_i32_181 = arith.constant 0 : i32
    %316 = arith.cmpi slt, %309, %c0_i32_181 : i32
    %317 = vector.broadcast %316 : i1 to vector<4x1xi1>
    %318 = vector.broadcast %317 : vector<4x1xi1> to vector<4x1xi1>
    %319 = arith.xori %315, %318 : vector<4x1xi1>
    %320 = arith.andi %319, %313 : vector<4x1xi1>
    %321 = vector.broadcast %309 : i32 to vector<4x1xi32>
    %322 = arith.addi %311, %321 : vector<4x1xi32>
    %323 = arith.select %320, %322, %311 : vector<4x1xi1>, vector<4x1xi32>
    %c0_i32_182 = arith.constant 0 : i32
    %324 = vector.broadcast %c0_i32_182 : i32 to vector<4x1xi32>
    %325 = arith.cmpi eq, %323, %324 : vector<4x1xi32>
    %c3_i32 = arith.constant 3 : i32
    %326 = vector.broadcast %c3_i32 : i32 to vector<4x1xi32>
    %327 = arith.cmpi eq, %323, %326 : vector<4x1xi32>
    %c1_183 = arith.constant 1 : index
    %c0_184 = arith.constant 0 : index
    %328 = tpu.strided_load %arg5[%c1_183, %c0_184] {strides = array<i32: 2, 1>} : memref<72x16xf32, #tpu.memory_space<vmem>>, vector<4x16xf32>
    %cst_185 = arith.constant 0.000000e+00 : f32
    %329 = vector.shape_cast %325 : vector<4x1xi1> to vector<4x1xi1>
    %330 = vector.broadcast %329 : vector<4x1xi1> to vector<4x16xi1>
    %331 = vector.broadcast %cst_185 : f32 to vector<4x16xf32>
    %332 = arith.select %330, %331, %328 : vector<4x16xi1>, vector<4x16xf32>
    %c432 = arith.constant 432 : index
    %c0_186 = arith.constant 0 : index
    %333 = vector.load %arg2[%c432, %c0_186] : memref<640x32xbf16, #tpu.memory_space<vmem>>, vector<16x32xbf16>
    %334 = arith.truncf %332 : vector<4x16xf32> to vector<4x16xbf16>
    %cst_187 = arith.constant dense<0.000000e+00> : vector<4x32xf32>
    %335 = tpu.matmul %334, %333, %cst_187 {dimension_numbers = #tpu.dot_dimension_numbers<[1], [0], [0], [1], [0, 0, 1, 1], [], []>} : vector<4x16xbf16>, vector<16x32xbf16>, vector<4x32xf32> -> vector<4x32xf32>
    %c2_188 = arith.constant 2 : index
    %c0_189 = arith.constant 0 : index
    %336 = tpu.strided_load %arg5[%c2_188, %c0_189] {strides = array<i32: 2, 1>} : memref<72x16xf32, #tpu.memory_space<vmem>>, vector<4x16xf32>
    %c448 = arith.constant 448 : index
    %c0_190 = arith.constant 0 : index
    %337 = vector.load %arg2[%c448, %c0_190] : memref<640x32xbf16, #tpu.memory_space<vmem>>, vector<16x32xbf16>
    %338 = arith.truncf %336 : vector<4x16xf32> to vector<4x16xbf16>
    %cst_191 = arith.constant dense<0.000000e+00> : vector<4x32xf32>
    %339 = tpu.matmul %338, %337, %cst_191 {dimension_numbers = #tpu.dot_dimension_numbers<[1], [0], [0], [1], [0, 0, 1, 1], [], []>} : vector<4x16xbf16>, vector<16x32xbf16>, vector<4x32xf32> -> vector<4x32xf32>
    %340 = arith.addf %335, %339 : vector<4x32xf32>
    %c3_192 = arith.constant 3 : index
    %c0_193 = arith.constant 0 : index
    %341 = tpu.strided_load %arg5[%c3_192, %c0_193] {strides = array<i32: 2, 1>} : memref<72x16xf32, #tpu.memory_space<vmem>>, vector<4x16xf32>
    %c464 = arith.constant 464 : index
    %c0_194 = arith.constant 0 : index
    %342 = vector.load %arg2[%c464, %c0_194] : memref<640x32xbf16, #tpu.memory_space<vmem>>, vector<16x32xbf16>
    %343 = arith.truncf %341 : vector<4x16xf32> to vector<4x16xbf16>
    %cst_195 = arith.constant dense<0.000000e+00> : vector<4x32xf32>
    %344 = tpu.matmul %343, %342, %cst_195 {dimension_numbers = #tpu.dot_dimension_numbers<[1], [0], [0], [1], [0, 0, 1, 1], [], []>} : vector<4x16xbf16>, vector<16x32xbf16>, vector<4x32xf32> -> vector<4x32xf32>
    %345 = arith.addf %340, %344 : vector<4x32xf32>
    %c8 = arith.constant 8 : index
    %c0_196 = arith.constant 0 : index
    %346 = vector.load %arg3[%c8, %c0_196] : memref<16x32xf32, #tpu.memory_space<vmem>>, vector<1x32xf32>
    %347 = vector.broadcast %346 : vector<1x32xf32> to vector<4x32xf32>
    %348 = arith.addf %345, %347 : vector<4x32xf32>
    %349 = vector.extract_strided_slice %348 {offsets = [0, 0], sizes = [4, 16], strides = [1, 1]} : vector<4x32xf32> to vector<4x16xf32>
    %cst_197 = arith.constant 0.000000e+00 : f32
    %350 = vector.broadcast %cst_197 : f32 to vector<4x16xf32>
    %351 = arith.maximumf %349, %350 : vector<4x16xf32>
    %352 = vector.extract_strided_slice %348 {offsets = [0, 16], sizes = [4, 16], strides = [1, 1]} : vector<4x32xf32> to vector<4x16xf32>
    %c2_198 = arith.constant 2 : index
    %c0_199 = arith.constant 0 : index
    %353 = vector.load %arg5[%c2_198, %c0_199] : memref<72x16xf32, #tpu.memory_space<vmem>>, vector<4x16xf32>
    tpu.vector_store %arg5[%c2_198, %c0_199], %351 {strides = array<i32>} : memref<72x16xf32, #tpu.memory_space<vmem>>, vector<4x16xf32>,
    %c1_200 = arith.constant 1 : index
    %c0_201 = arith.constant 0 : index
    %354 = vector.load %arg5[%c1_200, %c0_201] : memref<72x16xf32, #tpu.memory_space<vmem>>, vector<4x16xf32>
    %cst_202 = arith.constant 0.000000e+00 : f32
    %355 = vector.shape_cast %325 : vector<4x1xi1> to vector<4x1xi1>
    %356 = vector.broadcast %355 : vector<4x1xi1> to vector<4x16xi1>
    %357 = vector.broadcast %cst_202 : f32 to vector<4x16xf32>
    %358 = arith.select %356, %357, %354 : vector<4x16xi1>, vector<4x16xf32>
    %c480 = arith.constant 480 : index
    %c0_203 = arith.constant 0 : index
    %359 = vector.load %arg2[%c480, %c0_203] : memref<640x32xbf16, #tpu.memory_space<vmem>>, vector<16x16xbf16>
    %360 = arith.truncf %358 : vector<4x16xf32> to vector<4x16xbf16>
    %cst_204 = arith.constant dense<0.000000e+00> : vector<4x16xf32>
    %361 = tpu.matmul %360, %359, %cst_204 {dimension_numbers = #tpu.dot_dimension_numbers<[1], [0], [0], [1], [0, 0, 1, 1], [], []>} : vector<4x16xbf16>, vector<16x16xbf16>, vector<4x16xf32> -> vector<4x16xf32>
    %c2_205 = arith.constant 2 : index
    %c0_206 = arith.constant 0 : index
    %362 = vector.load %arg5[%c2_205, %c0_206] : memref<72x16xf32, #tpu.memory_space<vmem>>, vector<4x16xf32>
    %c496 = arith.constant 496 : index
    %c0_207 = arith.constant 0 : index
    %363 = vector.load %arg2[%c496, %c0_207] : memref<640x32xbf16, #tpu.memory_space<vmem>>, vector<16x16xbf16>
    %364 = arith.truncf %362 : vector<4x16xf32> to vector<4x16xbf16>
    %cst_208 = arith.constant dense<0.000000e+00> : vector<4x16xf32>
    %365 = tpu.matmul %364, %363, %cst_208 {dimension_numbers = #tpu.dot_dimension_numbers<[1], [0], [0], [1], [0, 0, 1, 1], [], []>} : vector<4x16xbf16>, vector<16x16xbf16>, vector<4x16xf32> -> vector<4x16xf32>
    %366 = arith.addf %361, %365 : vector<4x16xf32>
    %c3_209 = arith.constant 3 : index
    %c0_210 = arith.constant 0 : index
    %367 = vector.load %arg5[%c3_209, %c0_210] : memref<72x16xf32, #tpu.memory_space<vmem>>, vector<4x16xf32>
    %cst_211 = arith.constant 0.000000e+00 : f32
    %368 = vector.shape_cast %327 : vector<4x1xi1> to vector<4x1xi1>
    %369 = vector.broadcast %368 : vector<4x1xi1> to vector<4x16xi1>
    %370 = vector.broadcast %cst_211 : f32 to vector<4x16xf32>
    %371 = arith.select %369, %370, %367 : vector<4x16xi1>, vector<4x16xf32>
    %c512 = arith.constant 512 : index
    %c0_212 = arith.constant 0 : index
    %372 = vector.load %arg2[%c512, %c0_212] : memref<640x32xbf16, #tpu.memory_space<vmem>>, vector<16x16xbf16>
    %373 = arith.truncf %371 : vector<4x16xf32> to vector<4x16xbf16>
    %cst_213 = arith.constant dense<0.000000e+00> : vector<4x16xf32>
    %374 = tpu.matmul %373, %372, %cst_213 {dimension_numbers = #tpu.dot_dimension_numbers<[1], [0], [0], [1], [0, 0, 1, 1], [], []>} : vector<4x16xbf16>, vector<16x16xbf16>, vector<4x16xf32> -> vector<4x16xf32>
    %375 = arith.addf %366, %374 : vector<4x16xf32>
    %c9 = arith.constant 9 : index
    %c0_214 = arith.constant 0 : index
    %376 = vector.load %arg3[%c9, %c0_214] : memref<16x32xf32, #tpu.memory_space<vmem>>, vector<1x16xf32>
    %377 = vector.broadcast %376 : vector<1x16xf32> to vector<4x16xf32>
    %378 = arith.addf %375, %377 : vector<4x16xf32>
    %379 = arith.addf %378, %352 : vector<4x16xf32>
    %cst_215 = arith.constant 0.000000e+00 : f32
    %380 = vector.broadcast %cst_215 : f32 to vector<4x16xf32>
    %381 = arith.maximumf %379, %380 : vector<4x16xf32>
    %c2_216 = arith.constant 2 : index
    %c0_217 = arith.constant 0 : index
    %382 = vector.load %arg5[%c2_216, %c0_217] : memref<72x16xf32, #tpu.memory_space<vmem>>, vector<4x16xf32>
    tpu.vector_store %arg5[%c2_216, %c0_217], %381 {strides = array<i32>} : memref<72x16xf32, #tpu.memory_space<vmem>>, vector<4x16xf32>,
    %c1_218 = arith.constant 1 : index
    %c0_219 = arith.constant 0 : index
    %383 = vector.load %arg5[%c1_218, %c0_219] : memref<72x16xf32, #tpu.memory_space<vmem>>, vector<4x16xf32>
    %cst_220 = arith.constant 0.000000e+00 : f32
    %384 = vector.shape_cast %325 : vector<4x1xi1> to vector<4x1xi1>
    %385 = vector.broadcast %384 : vector<4x1xi1> to vector<4x16xi1>
    %386 = vector.broadcast %cst_220 : f32 to vector<4x16xf32>
    %387 = arith.select %385, %386, %383 : vector<4x16xi1>, vector<4x16xf32>
    %c528 = arith.constant 528 : index
    %c0_221 = arith.constant 0 : index
    %388 = vector.load %arg2[%c528, %c0_221] : memref<640x32xbf16, #tpu.memory_space<vmem>>, vector<16x16xbf16>
    %389 = arith.truncf %387 : vector<4x16xf32> to vector<4x16xbf16>
    %cst_222 = arith.constant dense<0.000000e+00> : vector<4x16xf32>
    %390 = tpu.matmul %389, %388, %cst_222 {dimension_numbers = #tpu.dot_dimension_numbers<[1], [0], [0], [1], [0, 0, 1, 1], [], []>} : vector<4x16xbf16>, vector<16x16xbf16>, vector<4x16xf32> -> vector<4x16xf32>
    %c2_223 = arith.constant 2 : index
    %c0_224 = arith.constant 0 : index
    %391 = vector.load %arg5[%c2_223, %c0_224] : memref<72x16xf32, #tpu.memory_space<vmem>>, vector<4x16xf32>
    %c544 = arith.constant 544 : index
    %c0_225 = arith.constant 0 : index
    %392 = vector.load %arg2[%c544, %c0_225] : memref<640x32xbf16, #tpu.memory_space<vmem>>, vector<16x16xbf16>
    %393 = arith.truncf %391 : vector<4x16xf32> to vector<4x16xbf16>
    %cst_226 = arith.constant dense<0.000000e+00> : vector<4x16xf32>
    %394 = tpu.matmul %393, %392, %cst_226 {dimension_numbers = #tpu.dot_dimension_numbers<[1], [0], [0], [1], [0, 0, 1, 1], [], []>} : vector<4x16xbf16>, vector<16x16xbf16>, vector<4x16xf32> -> vector<4x16xf32>
    %395 = arith.addf %390, %394 : vector<4x16xf32>
    %c3_227 = arith.constant 3 : index
    %c0_228 = arith.constant 0 : index
    %396 = vector.load %arg5[%c3_227, %c0_228] : memref<72x16xf32, #tpu.memory_space<vmem>>, vector<4x16xf32>
    %cst_229 = arith.constant 0.000000e+00 : f32
    %397 = vector.shape_cast %327 : vector<4x1xi1> to vector<4x1xi1>
    %398 = vector.broadcast %397 : vector<4x1xi1> to vector<4x16xi1>
    %399 = vector.broadcast %cst_229 : f32 to vector<4x16xf32>
    %400 = arith.select %398, %399, %396 : vector<4x16xi1>, vector<4x16xf32>
    %c560 = arith.constant 560 : index
    %c0_230 = arith.constant 0 : index
    %401 = vector.load %arg2[%c560, %c0_230] : memref<640x32xbf16, #tpu.memory_space<vmem>>, vector<16x16xbf16>
    %402 = arith.truncf %400 : vector<4x16xf32> to vector<4x16xbf16>
    %cst_231 = arith.constant dense<0.000000e+00> : vector<4x16xf32>
    %403 = tpu.matmul %402, %401, %cst_231 {dimension_numbers = #tpu.dot_dimension_numbers<[1], [0], [0], [1], [0, 0, 1, 1], [], []>} : vector<4x16xbf16>, vector<16x16xbf16>, vector<4x16xf32> -> vector<4x16xf32>
    %404 = arith.addf %395, %403 : vector<4x16xf32>
    %c10 = arith.constant 10 : index
    %c0_232 = arith.constant 0 : index
    %405 = vector.load %arg3[%c10, %c0_232] : memref<16x32xf32, #tpu.memory_space<vmem>>, vector<1x16xf32>
    %406 = vector.broadcast %405 : vector<1x16xf32> to vector<4x16xf32>
    %407 = arith.addf %404, %406 : vector<4x16xf32>
    %cst_233 = arith.constant 0.000000e+00 : f32
    %408 = vector.broadcast %cst_233 : f32 to vector<4x16xf32>
    %409 = arith.maximumf %407, %408 : vector<4x16xf32>
    %c2_234 = arith.constant 2 : index
    %c0_235 = arith.constant 0 : index
    %410 = vector.load %arg5[%c2_234, %c0_235] : memref<72x16xf32, #tpu.memory_space<vmem>>, vector<4x16xf32>
    tpu.vector_store %arg5[%c2_234, %c0_235], %409 {strides = array<i32>} : memref<72x16xf32, #tpu.memory_space<vmem>>, vector<4x16xf32>,
    %c1_236 = arith.constant 1 : index
    %c0_237 = arith.constant 0 : index
    %411 = vector.load %arg5[%c1_236, %c0_237] : memref<72x16xf32, #tpu.memory_space<vmem>>, vector<4x16xf32>
    %cst_238 = arith.constant 0.000000e+00 : f32
    %412 = vector.shape_cast %325 : vector<4x1xi1> to vector<4x1xi1>
    %413 = vector.broadcast %412 : vector<4x1xi1> to vector<4x16xi1>
    %414 = vector.broadcast %cst_238 : f32 to vector<4x16xf32>
    %415 = arith.select %413, %414, %411 : vector<4x16xi1>, vector<4x16xf32>
    %c576 = arith.constant 576 : index
    %c0_239 = arith.constant 0 : index
    %416 = vector.load %arg2[%c576, %c0_239] : memref<640x32xbf16, #tpu.memory_space<vmem>>, vector<16x16xbf16>
    %417 = arith.truncf %415 : vector<4x16xf32> to vector<4x16xbf16>
    %cst_240 = arith.constant dense<0.000000e+00> : vector<4x16xf32>
    %418 = tpu.matmul %417, %416, %cst_240 {dimension_numbers = #tpu.dot_dimension_numbers<[1], [0], [0], [1], [0, 0, 1, 1], [], []>} : vector<4x16xbf16>, vector<16x16xbf16>, vector<4x16xf32> -> vector<4x16xf32>
    %c2_241 = arith.constant 2 : index
    %c0_242 = arith.constant 0 : index
    %419 = vector.load %arg5[%c2_241, %c0_242] : memref<72x16xf32, #tpu.memory_space<vmem>>, vector<4x16xf32>
    %c592 = arith.constant 592 : index
    %c0_243 = arith.constant 0 : index
    %420 = vector.load %arg2[%c592, %c0_243] : memref<640x32xbf16, #tpu.memory_space<vmem>>, vector<16x16xbf16>
    %421 = arith.truncf %419 : vector<4x16xf32> to vector<4x16xbf16>
    %cst_244 = arith.constant dense<0.000000e+00> : vector<4x16xf32>
    %422 = tpu.matmul %421, %420, %cst_244 {dimension_numbers = #tpu.dot_dimension_numbers<[1], [0], [0], [1], [0, 0, 1, 1], [], []>} : vector<4x16xbf16>, vector<16x16xbf16>, vector<4x16xf32> -> vector<4x16xf32>
    %423 = arith.addf %418, %422 : vector<4x16xf32>
    %c3_245 = arith.constant 3 : index
    %c0_246 = arith.constant 0 : index
    %424 = vector.load %arg5[%c3_245, %c0_246] : memref<72x16xf32, #tpu.memory_space<vmem>>, vector<4x16xf32>
    %cst_247 = arith.constant 0.000000e+00 : f32
    %425 = vector.shape_cast %327 : vector<4x1xi1> to vector<4x1xi1>
    %426 = vector.broadcast %425 : vector<4x1xi1> to vector<4x16xi1>
    %427 = vector.broadcast %cst_247 : f32 to vector<4x16xf32>
    %428 = arith.select %426, %427, %424 : vector<4x16xi1>, vector<4x16xf32>
    %c608 = arith.constant 608 : index
    %c0_248 = arith.constant 0 : index
    %429 = vector.load %arg2[%c608, %c0_248] : memref<640x32xbf16, #tpu.memory_space<vmem>>, vector<16x16xbf16>
    %430 = arith.truncf %428 : vector<4x16xf32> to vector<4x16xbf16>
    %cst_249 = arith.constant dense<0.000000e+00> : vector<4x16xf32>
    %431 = tpu.matmul %430, %429, %cst_249 {dimension_numbers = #tpu.dot_dimension_numbers<[1], [0], [0], [1], [0, 0, 1, 1], [], []>} : vector<4x16xbf16>, vector<16x16xbf16>, vector<4x16xf32> -> vector<4x16xf32>
    %432 = arith.addf %423, %431 : vector<4x16xf32>
    %c11 = arith.constant 11 : index
    %c0_250 = arith.constant 0 : index
    %433 = vector.load %arg3[%c11, %c0_250] : memref<16x32xf32, #tpu.memory_space<vmem>>, vector<1x16xf32>
    %434 = vector.broadcast %433 : vector<1x16xf32> to vector<4x16xf32>
    %435 = arith.addf %432, %434 : vector<4x16xf32>
    %436 = arith.addf %435, %381 : vector<4x16xf32>
    %cst_251 = arith.constant 0.000000e+00 : f32
    %437 = vector.broadcast %cst_251 : f32 to vector<4x16xf32>
    %438 = arith.maximumf %436, %437 : vector<4x16xf32>
    %c12 = arith.constant 12 : index
    %c0_252 = arith.constant 0 : index
    %439 = vector.load %arg3[%c12, %c0_252] : memref<16x32xf32, #tpu.memory_space<vmem>>, vector<1x16xf32>
    %440 = vector.broadcast %439 : vector<1x16xf32> to vector<4x16xf32>
    %441 = arith.mulf %438, %440 : vector<4x16xf32>
    %c13 = arith.constant 13 : index
    %c0_253 = arith.constant 0 : index
    %442 = vector.load %arg3[%c13, %c0_253] : memref<16x32xf32, #tpu.memory_space<vmem>>, vector<1x16xf32>
    %443 = vector.broadcast %442 : vector<1x16xf32> to vector<4x16xf32>
    %444 = arith.addf %441, %443 : vector<4x16xf32>
    %cst_254 = arith.constant 0.000000e+00 : f32
    %445 = vector.broadcast %cst_254 : f32 to vector<4x16xf32>
    %446 = arith.maximumf %444, %445 : vector<4x16xf32>
    %cst_255 = arith.constant dense<0.000000e+00> : vector<16xf32>
    %447 = vector.multi_reduction <add>, %446, %cst_255 [0] : vector<4x16xf32> to vector<16xf32>
    %448 = vector.shape_cast %447 : vector<16xf32> to vector<1x16xf32>
    %cst_256 = arith.constant 2.500000e-01 : f32
    %449 = vector.broadcast %cst_256 : f32 to vector<1x16xf32>
    %450 = arith.mulf %448, %449 : vector<1x16xf32>
    %c624 = arith.constant 624 : index
    %c0_257 = arith.constant 0 : index
    %451 = vector.load %arg2[%c624, %c0_257] : memref<640x32xbf16, #tpu.memory_space<vmem>>, vector<16x16xbf16>
    %452 = arith.truncf %450 : vector<1x16xf32> to vector<1x16xbf16>
    %cst_258 = arith.constant dense<0.000000e+00> : vector<1x16xf32>
    %453 = tpu.matmul %452, %451, %cst_258 {dimension_numbers = #tpu.dot_dimension_numbers<[1], [0], [0], [1], [0, 0, 1, 1], [], []>} : vector<1x16xbf16>, vector<16x16xbf16>, vector<1x16xf32> -> vector<1x16xf32>
    %c14 = arith.constant 14 : index
    %c0_259 = arith.constant 0 : index
    %454 = vector.load %arg3[%c14, %c0_259] : memref<16x32xf32, #tpu.memory_space<vmem>>, vector<1x16xf32>
    %455 = arith.addf %453, %454 : vector<1x16xf32>
    %456 = vector.extract_strided_slice %455 {offsets = [0, 0], sizes = [1, 4], strides = [1, 1]} : vector<1x16xf32> to vector<1x4xf32>
    %c0_260 = arith.constant 0 : index
    %c0_261 = arith.constant 0 : index
    %c0_262 = arith.constant 0 : index
    %457 = vector.load %arg4[%c0_260, %c0_261, %c0_262] : memref<1x1x4xf32, #tpu.memory_space<vmem>>, vector<1x1x4xf32>
    %458 = vector.shape_cast %457 : vector<1x1x4xf32> to vector<1x4xf32>
    %459 = vector.shape_cast %456 : vector<1x4xf32> to vector<1x1x4xf32>
    tpu.vector_store %arg4[%c0_260, %c0_261, %c0_262], %459 {strides = array<i32>} : memref<1x1x4xf32, #tpu.memory_space<vmem>>, vector<1x1x4xf32>,
    return
  }
  func.func @transform_0(%arg0: i32) -> (i32, i32) {
    %c0_i32 = arith.constant 0 : i32
    %c0_i32_0 = arith.constant 0 : i32
    return %arg0, %c0_i32 : i32, i32
  }
  func.func @transform_1(%arg0: i32) -> (i32, i32) {
    %c0_i32 = arith.constant 0 : i32
    %c0_i32_0 = arith.constant 0 : i32
    %c0_i32_1 = arith.constant 0 : i32
    return %c0_i32, %c0_i32_0 : i32, i32
  }
  func.func @transform_2(%arg0: i32) -> (i32, i32) {
    %c0_i32 = arith.constant 0 : i32
    %c0_i32_0 = arith.constant 0 : i32
    %c0_i32_1 = arith.constant 0 : i32
    return %c0_i32, %c0_i32_0 : i32, i32
  }
  func.func @transform_3(%arg0: i32) -> (i32, i32, i32) {
    %c0_i32 = arith.constant 0 : i32
    %c0_i32_0 = arith.constant 0 : i32
    %c0_i32_1 = arith.constant 0 : i32
    return %arg0, %c0_i32, %c0_i32_0 : i32, i32, i32
  }
}

</mosaic_0001>

<bundles_post_ra>
// kernel: rsnet_forward.1
= control target key start
LH: loop header
LB: loop body
LE: loop exit
PB: predicated region body
PF: predicated region fallthrough
CT: control target
= control target key end

     0   :  { %8 = vsyncpa [#allocation4], 0  ;;  %s3999_s0 = inlined_call_operand.vmem [shape: bf16[128,16], index: 0, kind: input, shape index: {}]   ;;  %s4000_s1 = inlined_call_operand.vmem [shape: bf16[640,32], index: 1, kind: input, shape index: {}]   ;;  %s4001_s2 = inlined_call_operand.vmem [shape: f32[16,32], index: 2, kind: input, shape index: {}]   ;;  %s4002_s3 = inlined_call_operand.hbm [shape: f32[2,1,4], index: 3, kind: output, shape index: {}]  }
   0x1   :  { %10 = vsyncpa [#allocation4 + $0x1], 0  ;;  %s3442_s12 = smov 0   ;;  %s3444_s13 = smov 0  }
   0x2   :  { %s3446_s14 = smov 0   ;;  %s3448_s15 = smov 0  }
   0x3 LB: > { %s3463_s16 = sadd.s32 4294967295, %s3416_s15   ;;  %s2816_s17 = sadd.s32 4294967294, %s3416_s15   ;;  %s3416_s15 = sphi %s3448_s15, %s4022_s15   ;;  %s3412_s14 = sphi %s3446_s14, %s4021_s14   ;;  %s3408_s13 = sphi %s3444_s13, %s4020_s13   ;;  %s3404_s12 = sphi %s3442_s12, %s4019_s12  }
   0x4   : > { %s3467_s18 = sadd.s32 1, %s3416_s15   ;;  %s91_s19 = sadd.s32 1, %s3412_s14 }
   0x5   : > { %s88_s20 = ssub.s32 %s3416_s15, %s3467_s18  ;;  %p101_p0 = scmp.ne.s32.totalorder %s3412_s14, %s3408_s13 }
   0x6   : > { %p89_p1 = scmp.eq.s32.totalorder %s88_s20, 0  ;;  %p102_p2 = scmp.eq.s32.totalorder %s3463_s16, 1 }
   0x7   : > { %p107_p3 = scmp.ne.s32.totalorder %s3408_s13, %s3404_s12  ;;  %p108_p4 = scmp.eq.s32.totalorder %s2816_s17, 1 }
   0x8   : > { %s3478_s21 = scalar_select %p89_p1, %s3412_s14, %s91_s19  }
   0x9   : > { %p3480_p5 = por %p102_p2, %p101_p0  ;;  %p3484_p6 = por %p108_p4, %p107_p3 }
   0xa   : > { %p2819_p7 = scmp.ge.s32.totalorder %s3416_s15, 1  ;;  %p141_p8 = scmp.lt.s32.totalorder %s3416_s15, 3 }
   0xc   : > { %p142_p9 = pnand %p2819_p7, %p141_p8 }
   0xd   : > { %v3314_v0 = vld [vmem:[%s4000_s1 + $0x8] sm:$0xff] (!%p142_p9)   ;;  %s2820_s26 = sshll.u32 (!%p142_p9), %s3463_s16, 3  ;;  %v196_v1 = vlaneseq (!%p142_p9)  ;;  %v3315_v2 = vld [vmem:[%s4000_s1] sm:$0xff] (!%p142_p9)   ;;  %vm187_vm0 = vcmask (!%p142_p9), 130048   ;;  %v3316_v27 = vld [vmem:[%s4000_s1 + $0x10] sm:$0xff] (!%p142_p9)   ;;  %v3418_v39 = vmov (!%p142_p9), 0.0  }
   0xe   : > { %145 = sbr.rel (%p142_p9) target bundleno = 3390 (0xd3e), region = 32  ;;  %p165_p10 = scmp.lt.s32.totalorder (!%p142_p9), %s2820_s26, 15  ;;  %3024 = vmatprep.subr.bf16.mxu0 (!%p142_p9), %v3314_v0  ;;  %v3317_v38 = vld [vmem:[%s4000_s1 + $0x20] sm:$0xff] (!%p142_p9)   ;;  %3042 = vmatprep.subr.bf16.mxu1 (!%p142_p9), %v3418_v39  ;;  %vm3419_vm2 = vmmov (!%p142_p9), 0   ;;  %v3318_v47 = vld [vmem:[%s4000_s1 + $0x18] sm:$0xff] (!%p142_p9)   ;;  %v3319_v53 = vld [vmem:[%s4000_s1 + $0x28] sm:$0xff] (!%p142_p9)  }
   0xf   : > { %v3497_v3 = vshrl.u32 (!%p142_p9), %v196_v1, 7  ;;  %3025 = vmatpush3.bf16.msra.mxu0 (!%p142_p9), %v3314_v0  ;;  %3043 = vmatpush3.bf16.msra.mxu1 (!%p142_p9), %v3317_v38  ;;  %v3320_v58 = vld [vmem:[%s4000_s1 + $0x38] sm:$0xff] (!%p142_p9)   ;;  %v3321_v59 = vld [vmem:[%s4000_s1 + $0x30] sm:$0xff] (!%p142_p9)   ;;  %vm2153_vm8 = vcmask (!%p142_p9), 125952   ;;  %s162_s6 = sand.u32 (!%p142_p9), 1, %s3408_s13   ;;  %s2919_s9 = sshll.u32 (!%p142_p9), %s3463_s16, 4 }
  0x10   : > { %3030 = vmatprep.subr.bf16.mxu0 (!%p142_p9), %v3315_v2  ;;  %3044 = vmatprep.mubr.msk.bf16.mxu1 (!%p142_p9), %vm3419_vm2, %v3418_v39  ;;  %s163_s10 = scalar_lea.vmem (!%p142_p9), [#allocation3], %s162_s6  ;;  %vm2746_vm10 = vcmask (!%p142_p9), 24576   ;;  %s3957_s20 = scalar_lea.hbm (!%p142_p9), %s4002_s3, %s2919_s9 }
  0x11   : > { %v205_v4 = vand.u32 (!%p142_p9), 31, %v3497_v3  ;;  %3048 = vmatprep.subr.bf16.mxu1 (!%p142_p9), %v3418_v39  ;;  %v496_v45 = vand.u32 (!%p142_p9), 15, %v3497_v3  ;;  %s2761_s11 = sshll.u32 (!%p142_p9), %s163_s10, 4  ;;  %s2749_s16 = scalar_lea.sflag (!%p142_p9), [#allocation4], %s162_s6  ;;  %s3959_s11 = int_to_ptr.vmem [resolvable:$true] %s2761_s11 }
  0x12   : > { %s3354_s24 = scalar_lea.vmem (!%p142_p9), %s3959_s11, 16  ;;  %s3421_s25 = smov (!%p142_p9), [#allocation3]  }
  0x13   : > { %vm3503_vm1 = vcmp.eq.s32.totalorder (!%p142_p9), %v205_v4, 0  ;;  %vm3545_vm3 = vcmp.eq.s32.totalorder (!%p142_p9), %v496_v45, 0  ;;  %p3355_p11 = scmp.ne.s32.totalorder (!%p142_p9), %s3959_s11, %s3354_s24 }
  0x15   : > { %s4024_s26 = smov (!%p165_p10, %s2820_s26), 15  ;;  %p3356_p12 = pnand %p3355_p11, %p3480_p5 }
  0x16   : > { %s2821_s29 = sshll.u32 %s4024_s26, 2  ;;  %s3358_s26 = sshll.u32 %s3421_s25, 4  ;;  %s3359_s26 = int_to_ptr.vmem [resolvable:$false] %s3358_s26 }
  0x17   : > { %s168_s5 = scalar_lea.vmem %s3999_s0, %s2821_s29  ;;  %s3420_s29 = smov 112  }
  0x18   : > { %v2923_v5 = vld [vmem:[%s168_s5] sm:$0xff]   ;;  %v2938_v6 = vld [vmem:[%s168_s5 + $0x8] sm:$0xff]   ;;  %v2939_v7 = vld [vmem:[%s168_s5 + $0x10] sm:$0xff]   ;;  %p3357_p13 = pneg %p3356_p12  ;;  %p3361_p0 = scmp.lt.s32.totalorder %s3959_s11, %s3359_s26 }
  0x19   : > { %v2924_v8 = vunpack.c.l.bf16 %v2923_v5  ;;  %v2925_v9 = vunpack.c.h.bf16 %v2923_v5  ;;  %v2928_v10 = vunpack.c.l.bf16 %v2938_v6  ;;  %v2929_v11 = vunpack.c.h.bf16 %v2938_v6  ;;  %v2940_v12 = vld [vmem:[%s168_s5 + $0x18] sm:$0xff]  }
  0x1a   : > { %v2932_v14 = vunpack.c.l.bf16 %v2939_v7  ;;  %v2933_v15 = vunpack.c.h.bf16 %v2939_v7  ;;  %v2936_v16 = vunpack.c.l.bf16 %v2940_v12  ;;  %v2937_v17 = vunpack.c.h.bf16 %v2940_v12 }
  0x1b   : > { %188 = vst.msk [vmem:[#allocation2 + $0x2] sm:$0xff] %vm187_vm0, %v2924_v8  ;;  %189 = vst.msk [vmem:[#allocation2 + $0xa] sm:$0xff] %vm187_vm0, %v2925_v9  ;;  %v2837_v8 = vld [vmem:[%s4001_s2] ss:$0 sm:$0xff] }
  0x1c   : > { %190 = vst.msk [vmem:[#allocation2 + $0x12] sm:$0xff] %vm187_vm0, %v2928_v10  ;;  %191 = vst.msk [vmem:[#allocation2 + $0x1a] sm:$0xff] %vm187_vm0, %v2929_v11 }
  0x1d   : > { %192 = vst.msk [vmem:[#allocation2 + $0x22] sm:$0xff] %vm187_vm0, %v2932_v14  ;;  %193 = vst.msk [vmem:[#allocation2 + $0x2a] sm:$0xff] %vm187_vm0, %v2933_v15 }
  0x1e   : > { %194 = vst.msk [vmem:[#allocation2 + $0x32] sm:$0xff] %vm187_vm0, %v2936_v16  ;;  %195 = vst.msk [vmem:[#allocation2 + $0x3a] sm:$0xff] %vm187_vm0, %v2937_v17 }
  0x22   : > { %v254_v18 = vld [vmem:[#allocation2 + $0x1] ss:$2 sm:$0xff]  ;;  %v278_v19 = vld [vmem:[#allocation2 + $0x2] ss:$2 sm:$0xff] }
  0x23   : > { %v280_v20 = vld [vmem:[#allocation2 + $0x12] ss:$2 sm:$0xff]  ;;  %v256_v25 = vld [vmem:[#allocation2 + $0x11] ss:$2 sm:$0xff]  ;;  %v269_v26 = vsel %vm3503_vm1, 0.0, %v254_v18  ;;  %v198_v18 = vadd.s32 8, %v3497_v3 }
  0x24   : > { %v287_v21 = vpack.c.bf16 %v280_v20, %v278_v19  ;;  %v282_v22 = vld [vmem:[#allocation2 + $0x22] ss:$2 sm:$0xff]  ;;  %v275_v28 = vpack.c.bf16 %v256_v25, %v269_v26  ;;  %v258_v29 = vld [vmem:[#allocation2 + $0x21] ss:$2 sm:$0xff] }
  0x25   : > { %v284_v23 = vld [vmem:[#allocation2 + $0x32] ss:$2 sm:$0xff]  ;;  %v260_v30 = vld [vmem:[#allocation2 + $0x31] ss:$2 sm:$0xff] }
  0x26   : > { %v288_v24 = vpack.c.bf16 %v284_v23, %v282_v22  ;;  %3026 = vmatprep.mubr.msk.bf16.mxu0 %vm187_vm0, %v287_v21  ;;  %v412_v31 = vld [vmem:[#allocation2 + $0x3] ss:$2 sm:$0xff]  ;;  %v414_v32 = vld [vmem:[#allocation2 + $0x13] ss:$2 sm:$0xff]  ;;  %v276_v33 = vpack.c.bf16 %v260_v30, %v258_v29  ;;  %v503_v22 = vand.u32 15, %v198_v18 }
  0x27   : > { %v421_v34 = vpack.c.bf16 %v414_v32, %v412_v31  ;;  %v416_v35 = vld [vmem:[#allocation2 + $0x23] ss:$2 sm:$0xff]  ;;  %v418_v36 = vld [vmem:[#allocation2 + $0x33] ss:$2 sm:$0xff] }
  0x28   : > { %3027 = vmatmul.mubr.msk.bf16.vlgmr.msra.gmra.mrb[0].mxu0 %vm187_vm0, %v288_v24  ;;  %v422_v37 = vpack.c.bf16 %v418_v36, %v416_v35  ;;  %v3322_v21 = vld [vmem:[%s4000_s1 + $0x40] sm:$0xff]   ;;  %vm3587_vm4 = vcmp.eq.s32.totalorder %v503_v22, 15 }
  0x29   : > { %3031 = vmatpush3.bf16.msra.mxu0 %v3315_v2  ;;  %3032 = vmatprep.mubr.msk.bf16.mxu0 %vm187_vm0, %v275_v28 }
  0x2a   : > { %3036 = vmatprep.subr.bf16.mxu0 %v3316_v27 }
  0x34   : > { %3033 = vmatmul.mubr.msk.bf16.vlgmr.msra.gmra.mrb[0].mxu0 %vm187_vm0, %v276_v33  ;;  %v3323_v33 = vld [vmem:[%s4000_s1 + $0x50] sm:$0xff]  }
  0x35   : > { %3037 = vmatpush3.bf16.msra.mxu0 %v3316_v27  ;;  %3038 = vmatprep.mubr.msk.bf16.mxu0 %vm187_vm0, %v421_v34  ;;  %v3324_v34 = vld [vmem:[%s4000_s1 + $0x48] sm:$0xff]  }
  0x36   : > { %3060 = vmatprep.subr.bf16.mxu0 %v3418_v39 }
  0x40   : > { %3039 = vmatmul.mubr.msk.bf16.vlgmr.msra.gmra.mrb[0].mxu0 %vm187_vm0, %v422_v37 }
  0x41   : > { %3062 = vmatprep.mubr.msk.bf16.mxu0 %vm3419_vm2, %v3418_v39  ;;  %3061 = vmatpush3.bf16.msra.mxu0 %v3320_v58 }
  0x42   : > { %3072 = vmatprep.subr.bf16.mxu0 %v3418_v39 }
 0x113   : > { %v3040_v40 = vpop.f32.mrb[0].mxu0 }
 0x114   : > { %490 = vst.msk [vmem:[#allocation2 + $0x12] sm:$0xff] %vm187_vm0, %v3040_v40  ;;  %v469_v41 = vpop.f32.mrb[1].mxu0 }
 0x115   : > { %488 = vst.msk [vmem:[#allocation2 + $0x2] sm:$0xff] %vm187_vm0, %v469_v41  ;;  %v3041_v42 = vpop.f32.mrb[2].mxu0 }
 0x116   : > { %491 = vst.msk [vmem:[#allocation2 + $0x1a] sm:$0xff] %vm187_vm0, %v3041_v42  ;;  %v472_v43 = vpop.f32.mrb[3].mxu0 }
 0x117   : > { %489 = vst.msk [vmem:[#allocation2 + $0xa] sm:$0xff] %vm187_vm0, %v472_v43 }
 0x11d   : > { %v532_v44 = vld [vmem:[#allocation2 + $0x12] ss:$2 sm:$0xff]  ;;  %v637_v56 = vld [vmem:[#allocation2 + $0x13] ss:$2 sm:$0xff] }
 0x11e   : > { %v531_v46 = vld [vmem:[#allocation2 + $0x2] ss:$2 sm:$0xff]  ;;  %v520_v49 = vld [vmem:[#allocation2 + $0x1] ss:$2 sm:$0xff]  ;;  %v521_v51 = vld [vmem:[#allocation2 + $0x11] ss:$2 sm:$0xff] }
 0x11f   : > { %v535_v48 = vpack.c.bf16 %v532_v44, %v531_v46  ;;  %v526_v52 = vsel %vm3545_vm3, 0.0, %v520_v49  ;;  %v636_v55 = vld [vmem:[#allocation2 + $0x3] ss:$2 sm:$0xff] }
 0x120   : > { %v530_v54 = vpack.c.bf16 %v521_v51, %v526_v52  ;;  %v640_v57 = vpack.c.bf16 %v637_v56, %v636_v55 }
 0x121   : > { %3045 = vmatmul.mubr.msk.bf16.vlgmr.msra.gmra.mrb[0].mxu1 %vm187_vm0, %v535_v48  ;;  %v2844_v48 = vld [vmem:[%s4001_s2 + $0x1] ss:$0 sm:$0xff] }
 0x122   : > { %3049 = vmatpush3.bf16.msra.mxu1 %v3318_v47  ;;  %3050 = vmatprep.mubr.msk.bf16.mxu1 %vm3419_vm2, %v3418_v39 }
 0x123   : > { %3054 = vmatprep.subr.bf16.mxu1 %v3418_v39 }
 0x129   : > { %3051 = vmatmul.mubr.msk.bf16.vlgmr.msra.gmra.mrb[4].mxu1 %vm187_vm0, %v530_v54 }
 0x12a   : > { %3055 = vmatpush3.bf16.msra.mxu1 %v3319_v53  ;;  %3056 = vmatprep.mubr.msk.bf16.mxu1 %vm3419_vm2, %v3418_v39 }
 0x12b   : > { %3066 = vmatprep.subr.bf16.mxu1 %v3418_v39 }
 0x131   : > { %3057 = vmatmul.mubr.msk.bf16.vlgmr.msra.gmra.mrb[8].mxu1 %vm187_vm0, %v640_v57 }
 0x132   : > { %3068 = vmatprep.mubr.msk.bf16.mxu1 %vm3419_vm2, %v3418_v39  ;;  %3067 = vmatpush3.bf16.msra.mxu1 %v3321_v59 }
 0x133   : > { %3078 = vmatprep.subr.bf16.mxu1 %v3418_v39 }
 0x1f4   : > { %v579_v60 = vpop.f32.mrb[0].mxu1 }
 0x1f5   : > { %v3046_v61 = vpop.f32.mrb[1].mxu1 }
 0x1f6   : > { %v582_v62 = vpop.f32.mrb[2].mxu1 }
 0x1f7   : > { %v3047_v63 = vpop.f32.mrb[3].mxu1 }
 0x1fc   : > { %v629_v0 = vpop.f32.mrb[4].mxu1 }
 0x1fd   : > { %v630_v1 = vadd.f32 %v629_v0, %v579_v60  ;;  %v3052_v2 = vpop.f32.mrb[5].mxu1  ;;  %v3325_v0 = vld [vmem:[%s4000_s1 + $0x58] sm:$0xff]  }
 0x1fe   : > { %v632_v4 = vpop.f32.mrb[6].mxu1 }
 0x1ff   : > { %v633_v5 = vadd.f32 %v632_v4, %v582_v62  ;;  %v3053_v6 = vpop.f32.mrb[7].mxu1 }
 0x204   : > { %v684_v7 = vpop.f32.mrb[8].mxu1 }
 0x205   : > { %v691_v9 = vadd.f32 %v684_v7, %v630_v1  ;;  %v3058_v10 = vpop.f32.mrb[9].mxu1 }
 0x206   : > { %v687_v11 = vpop.f32.mrb[10].mxu1 }
 0x207   : > { %v692_v12 = vadd.f32 %v687_v11, %v633_v5  ;;  %v3059_v13 = vpop.f32.mrb[11].mxu1  ;;  %v698_v14 = vadd.f32 %v2837_v8, %v691_v9  ;;  %v3326_v11 = vld [vmem:[%s4000_s1 + $0x68] sm:$0xff]  }
 0x209   : > { %v699_v15 = vadd.f32 %v2837_v8, %v692_v12  ;;  %888 = vrot.lane.b32.xlu0 %v698_v14, %s3420_s29  ;;  %v700_v16 = vmax.f32 %v698_v14, 0.0  ;;  %v3327_v12 = vld [vmem:[%s4000_s1 + $0x60] sm:$0xff]  }
 0x20b   : > { %v701_v17 = vmax.f32 %v699_v15, 0.0  ;;  %702 = vst.msk [vmem:[#allocation2 + $0x2] sm:$0xff] %vm187_vm0, %v700_v16 }
 0x20d   : > { %703 = vst.msk [vmem:[#allocation2 + $0xa] sm:$0xff] %vm187_vm0, %v701_v17  ;;  %890 = vrot.lane.b32.xlu0 %v699_v15, %s3420_s29 }
 0x212   : > { %v704_v19 = vld [vmem:[#allocation2 + $0x1] sm:$0xff] }
 0x213   : > { %v706_v20 = vsel %vm3545_vm3, 0.0, %v704_v19  ;;  %v711_v23 = vld [vmem:[#allocation2 + $0x2] sm:$0xff] }
 0x214   : > { %v712_v24 = vld [vmem:[#allocation2 + $0xa] sm:$0xff] }
 0x215   : > { %v705_v25 = vld [vmem:[#allocation2 + $0x9] sm:$0xff]  ;;  %v715_v26 = vpack.c.bf16 %v712_v24, %v711_v23  ;;  %v2851_v24 = vld [vmem:[%s4001_s2 + $0x2] ss:$0 sm:$0xff] }
 0x216   : > { %v710_v27 = vpack.c.bf16 %v705_v25, %v706_v20  ;;  %v817_v29 = vld [vmem:[#allocation2 + $0xb] sm:$0xff]  ;;  %v816_v30 = vld [vmem:[#allocation2 + $0x3] sm:$0xff] }
 0x217   : > { %3063 = vmatmul.mubr.msk.bf16.vlgmr.msra.gmra.mrb[4].mxu0 %vm187_vm0, %v715_v26  ;;  %v823_v31 = vsel %vm3587_vm4, 0.0, %v817_v29 }
 0x218   : > { %3069 = vmatmul.mubr.msk.bf16.vlgmr.msra.gmra.mrb[12].mxu1 %vm187_vm0, %v710_v27  ;;  %3073 = vmatpush3.bf16.msra.mxu0 %v3322_v21  ;;  %v826_v32 = vpack.c.bf16 %v823_v31, %v816_v30 }
 0x219   : > { %3074 = vmatprep.mubr.msk.bf16.mxu0 %vm3419_vm2, %v3418_v39  ;;  %3084 = vmatprep.subr.bf16.mxu0 %v3418_v39 }
 0x21a   : > { %3080 = vmatprep.mubr.msk.bf16.mxu1 %vm3419_vm2, %v3418_v39  ;;  %3079 = vmatpush3.bf16.msra.mxu1 %v3323_v33 }
 0x21b   : > { %3090 = vmatprep.subr.bf16.mxu1 %v3418_v39 }
 0x21f   : > { %3075 = vmatmul.mubr.msk.bf16.vlgmr.msra.gmra.mrb[8].mxu0 %vm187_vm0, %v826_v32 }
 0x220   : > { %3086 = vmatprep.mubr.msk.bf16.mxu0 %vm3419_vm2, %v3418_v39  ;;  %3085 = vmatpush3.bf16.msra.mxu0 %v3324_v34 }
 0x221   : > { %3096 = vmatprep.subr.bf16.mxu0 %v3418_v39 }
 0x27b   : > { %v889_v46 = vpop.permute.xlu0 %888 }
 0x27f   : > { %v891_v58 = vpop.permute.xlu0 %890 }
 0x2ea   : > { %v759_v35 = vpop.f32.mrb[4].mxu0 }
 0x2eb   : > { %v809_v36 = vpop.f32.mrb[12].mxu1  ;;  %v3064_v38 = vpop.f32.mrb[5].mxu0 }
 0x2ec   : > { %v810_v37 = vadd.f32 %v809_v36, %v759_v35  ;;  %v3070_v40 = vpop.f32.mrb[13].mxu1  ;;  %v762_v41 = vpop.f32.mrb[6].mxu0 }
 0x2ed   : > { %v812_v42 = vpop.f32.mrb[14].mxu1  ;;  %v3065_v44 = vpop.f32.mrb[7].mxu0 }
 0x2ee   : > { %v813_v43 = vadd.f32 %v812_v42, %v762_v41  ;;  %v3071_v45 = vpop.f32.mrb[15].mxu1 }
 0x2f2   : > { %v870_v47 = vpop.f32.mrb[8].mxu0 }
 0x2f3   : > { %v877_v49 = vadd.f32 %v870_v47, %v810_v37  ;;  %v3076_v51 = vpop.f32.mrb[9].mxu0  ;;  %v3328_v37 = vld [vmem:[%s4000_s1 + $0x70] sm:$0xff]   ;;  %v3329_v47 = vld [vmem:[%s4000_s1 + $0x80] sm:$0xff]  }
 0x2f4   : > { %v873_v52 = vpop.f32.mrb[10].mxu0 }
 0x2f5   : > { %v884_v53 = vadd.f32 %v2844_v48, %v877_v49  ;;  %v878_v54 = vadd.f32 %v873_v52, %v813_v43  ;;  %v3077_v55 = vpop.f32.mrb[11].mxu0 }
 0x2f7   : > { %v3612_v56 = vadd.f32 %v889_v46, %v884_v53  ;;  %v885_v57 = vadd.f32 %v2844_v48, %v878_v54  ;;  %v3330_v48 = vld [vmem:[%s4000_s1 + $0x78] sm:$0xff]  }
 0x2f9   : > { %v896_v59 = vmax.f32 %v3612_v56, 0.0  ;;  %v3615_v60 = vadd.f32 %v891_v58, %v885_v57  ;;  %v3331_v56 = vld [vmem:[%s4000_s1 + $0x88] sm:$0xff]  }
 0x2fb   : > { %898 = vst.msk [vmem:[#allocation2 + $0x2] sm:$0xff] %vm187_vm0, %v896_v59  ;;  %v897_v61 = vmax.f32 %v3615_v60, 0.0 }
 0x2fd   : > { %899 = vst.msk [vmem:[#allocation2 + $0xa] sm:$0xff] %vm187_vm0, %v897_v61 }
 0x302   : > { %v900_v62 = vld [vmem:[#allocation2 + $0x1] sm:$0xff] }
 0x303   : > { %v902_v63 = vsel %vm3545_vm3, 0.0, %v900_v62  ;;  %v907_v1 = vld [vmem:[#allocation2 + $0x2] sm:$0xff] }
 0x304   : > { %v908_v2 = vld [vmem:[#allocation2 + $0xa] sm:$0xff] }
 0x305   : > { %v901_v4 = vld [vmem:[#allocation2 + $0x9] sm:$0xff]  ;;  %v911_v5 = vpack.c.bf16 %v908_v2, %v907_v1 }
 0x306   : > { %v906_v6 = vpack.c.bf16 %v901_v4, %v902_v63  ;;  %v1013_v7 = vld [vmem:[#allocation2 + $0xb] sm:$0xff]  ;;  %v1012_v8 = vld [vmem:[#allocation2 + $0x3] sm:$0xff] }
 0x307   : > { %3081 = vmatmul.mubr.msk.bf16.vlgmr.msra.gmra.mrb[16].mxu1 %vm187_vm0, %v911_v5  ;;  %v1015_v9 = vsel %vm3587_vm4, 0.0, %v1013_v7 }
 0x308   : > { %3087 = vmatmul.mubr.msk.bf16.vlgmr.msra.gmra.mrb[12].mxu0 %vm187_vm0, %v906_v6  ;;  %3091 = vmatpush3.bf16.msra.mxu1 %v3325_v0  ;;  %v1018_v10 = vpack.c.bf16 %v1015_v9, %v1012_v8  ;;  %v2858_v0 = vld [vmem:[%s4001_s2 + $0x3] ss:$0 sm:$0xff] }
 0x309   : > { %3092 = vmatprep.mubr.msk.bf16.mxu1 %vm3419_vm2, %v3418_v39  ;;  %3102 = vmatprep.subr.bf16.mxu1 %v3418_v39 }
 0x30a   : > { %3098 = vmatprep.mubr.msk.bf16.mxu0 %vm3419_vm2, %v3418_v39  ;;  %3097 = vmatpush3.bf16.msra.mxu0 %v3326_v11 }
 0x30b   : > { %3108 = vmatprep.subr.bf16.mxu0 %v3418_v39 }
 0x30f   : > { %3093 = vmatmul.mubr.msk.bf16.vlgmr.msra.gmra.mrb[20].mxu1 %vm187_vm0, %v1018_v10 }
 0x310   : > { %3104 = vmatprep.mubr.msk.bf16.mxu1 %vm3419_vm2, %v3418_v39  ;;  %3103 = vmatpush3.bf16.msra.mxu1 %v3327_v12 }
 0x311   : > { %3114 = vmatprep.subr.bf16.mxu1 %v3418_v39 }
 0x3da   : > { %v955_v13 = vpop.f32.mrb[16].mxu1 }
 0x3db   : > { %v1005_v14 = vpop.f32.mrb[12].mxu0  ;;  %v3082_v16 = vpop.f32.mrb[17].mxu1 }
 0x3dc   : > { %v1006_v15 = vadd.f32 %v1005_v14, %v955_v13  ;;  %v3088_v17 = vpop.f32.mrb[13].mxu0  ;;  %v958_v18 = vpop.f32.mrb[18].mxu1  ;;  %v1270_v13 = vand.u32 7, %v3497_v3 }
 0x3dd   : > { %v1008_v19 = vpop.f32.mrb[14].mxu0  ;;  %v3083_v21 = vpop.f32.mrb[19].mxu1 }
 0x3de   : > { %v1009_v20 = vadd.f32 %v1008_v19, %v958_v18  ;;  %v3089_v22 = vpop.f32.mrb[15].mxu0  ;;  %vm3689_vm5 = vcmp.eq.s32.totalorder %v1270_v13, 0  ;;  %v3332_v19 = vld [vmem:[%s4000_s1 + $0x98] sm:$0xff]   ;;  %vm3727_vm6 = vcmp.eq.s32.totalorder %v1270_v13, 7 }
 0x3e2   : > { %v1062_v23 = vpop.f32.mrb[20].mxu1 }
 0x3e3   : > { %v1069_v25 = vadd.f32 %v1062_v23, %v1006_v15  ;;  %v3094_v26 = vpop.f32.mrb[21].mxu1 }
 0x3e4   : > { %v1065_v27 = vpop.f32.mrb[22].mxu1 }
 0x3e5   : > { %v1076_v29 = vadd.f32 %v2851_v24, %v1069_v25  ;;  %v1070_v30 = vadd.f32 %v1065_v27, %v1009_v20  ;;  %v3095_v31 = vpop.f32.mrb[23].mxu1  ;;  %v3333_v20 = vld [vmem:[%s4000_s1 + $0x90] sm:$0xff]  }
 0x3e7   : > { %v1078_v32 = vmax.f32 %v1076_v29, 0.0  ;;  %v1077_v33 = vadd.f32 %v2851_v24, %v1070_v30 }
 0x3e9   : > { %1080 = vst.msk [vmem:[#allocation2 + $0x2] sm:$0xff] %vm187_vm0, %v1078_v32  ;;  %v1079_v34 = vmax.f32 %v1077_v33, 0.0  ;;  %v2865_v32 = vld [vmem:[%s4001_s2 + $0x4] ss:$0 sm:$0xff] }
 0x3eb   : > { %1081 = vst.msk [vmem:[#allocation2 + $0xa] sm:$0xff] %vm187_vm0, %v1079_v34 }
 0x3f0   : > { %v1082_v35 = vld [vmem:[#allocation2 + $0x1] sm:$0xff] }
 0x3f1   : > { %v1084_v36 = vsel %vm3545_vm3, 0.0, %v1082_v35  ;;  %v1089_v38 = vld [vmem:[#allocation2 + $0x2] sm:$0xff] }
 0x3f2   : > { %v1090_v40 = vld [vmem:[#allocation2 + $0xa] sm:$0xff] }
 0x3f3   : > { %v1083_v41 = vld [vmem:[#allocation2 + $0x9] sm:$0xff]  ;;  %v1093_v42 = vpack.c.bf16 %v1090_v40, %v1089_v38 }
 0x3f4   : > { %v1088_v43 = vpack.c.bf16 %v1083_v41, %v1084_v36  ;;  %v1195_v44 = vld [vmem:[#allocation2 + $0xb] sm:$0xff]  ;;  %v1194_v50 = vld [vmem:[#allocation2 + $0x3] sm:$0xff] }
 0x3f5   : > { %3099 = vmatmul.mubr.msk.bf16.vlgmr.msra.gmra.mrb[16].mxu0 %vm187_vm0, %v1093_v42  ;;  %v1197_v45 = vsel %vm3587_vm4, 0.0, %v1195_v44  ;;  %v3334_v41 = vld [vmem:[%s4000_s1 + $0xa0] sm:$0xff]  }
 0x3f6   : > { %3105 = vmatmul.mubr.msk.bf16.vlgmr.msra.gmra.mrb[24].mxu1 %vm187_vm0, %v1088_v43  ;;  %3109 = vmatpush3.bf16.msra.mxu0 %v3328_v37  ;;  %v1200_v46 = vpack.c.bf16 %v1197_v45, %v1194_v50 }
 0x3f7   : > { %3110 = vmatprep.mubr.msk.bf16.mxu0 %vm3419_vm2, %v3418_v39  ;;  %3120 = vmatprep.subr.bf16.mxu0 %v3418_v39 }
 0x3f8   : > { %3116 = vmatprep.mubr.msk.bf16.mxu1 %vm3419_vm2, %v3418_v39  ;;  %3115 = vmatpush3.bf16.msra.mxu1 %v3329_v47 }
 0x3f9   : > { %3126 = vmatprep.subr.bf16.mxu1 %v3418_v39 }
 0x3fd   : > { %3111 = vmatmul.mubr.msk.bf16.vlgmr.msra.gmra.mrb[20].mxu0 %vm187_vm0, %v1200_v46 }
 0x3fe   : > { %3122 = vmatprep.mubr.msk.bf16.mxu0 %vm3419_vm2, %v3418_v39  ;;  %3121 = vmatpush3.bf16.msra.mxu0 %v3330_v48 }
 0x3ff   : > { %3132 = vmatprep.subr.bf16.mxu0 %v3418_v39 }
 0x4c8   : > { %v1137_v28 = vpop.f32.mrb[16].mxu0 }
 0x4c9   : > { %v1187_v49 = vpop.f32.mrb[24].mxu1  ;;  %v3100_v52 = vpop.f32.mrb[17].mxu0 }
 0x4ca   : > { %v1188_v51 = vadd.f32 %v1187_v49, %v1137_v28  ;;  %v3106_v53 = vpop.f32.mrb[25].mxu1  ;;  %v1140_v54 = vpop.f32.mrb[18].mxu0  ;;  %v3335_v28 = vld [vmem:[%s4000_s1 + $0xb0] sm:$0xff]   ;;  %v3336_v49 = vld [vmem:[%s4000_s1 + $0xa8] sm:$0xff]  }
 0x4cb   : > { %v1190_v55 = vpop.f32.mrb[26].mxu1  ;;  %v3101_v58 = vpop.f32.mrb[19].mxu0 }
 0x4cc   : > { %v1191_v57 = vadd.f32 %v1190_v55, %v1140_v54  ;;  %v3107_v62 = vpop.f32.mrb[27].mxu1 }
 0x4d0   : > { %v1244_v63 = vpop.f32.mrb[20].mxu0 }
 0x4d1   : > { %v1251_v1 = vadd.f32 %v1244_v63, %v1188_v51  ;;  %v3112_v2 = vpop.f32.mrb[21].mxu0 }
 0x4d2   : > { %v1247_v4 = vpop.f32.mrb[22].mxu0 }
 0x4d3   : > { %v1258_v5 = vadd.f32 %v2858_v0, %v1251_v1  ;;  %v1252_v6 = vadd.f32 %v1247_v4, %v1191_v57  ;;  %v3113_v7 = vpop.f32.mrb[23].mxu0  ;;  %v2872_v1 = vld [vmem:[%s4001_s2 + $0x5] ss:$0 sm:$0xff] }
 0x4d5   : > { %v1260_v8 = vadd.f32 %v1258_v5, %v896_v59  ;;  %v1259_v9 = vadd.f32 %v2858_v0, %v1252_v6 }
 0x4d7   : > { %v1262_v10 = vmax.f32 %v1260_v8, 0.0  ;;  %v1261_v11 = vadd.f32 %v1259_v9, %v897_v61 }
 0x4d9   : > { %1264 = vst.msk [vmem:[#allocation2 + $0x2] sm:$0xff] %vm187_vm0, %v1262_v10  ;;  %v1263_v12 = vmax.f32 %v1261_v11, 0.0 }
 0x4db   : > { %1265 = vst.msk [vmem:[#allocation2 + $0xa] sm:$0xff] %vm187_vm0, %v1263_v12  ;;  %v3337_v12 = vld [vmem:[%s4000_s1 + $0xb8] sm:$0xff]  }
 0x4e2   : > { %v1287_v15 = vld [vmem:[#allocation2 + $0x2] ss:$2 sm:$0xff]  ;;  %v1280_v59 = vld [vmem:[#allocation2 + $0x1] ss:$2 sm:$0xff] }
 0x4e3   : > { %v1290_v16 = vpack.c.bf16 %v1287_v15, %v1287_v15  ;;  %v1283_v60 = vsel %vm3689_vm5, 0.0, %v1280_v59  ;;  %v1389_v17 = vld [vmem:[#allocation2 + $0x3] ss:$2 sm:$0xff] }
 0x4e4   : > { %v1286_v61 = vpack.c.bf16 %v1283_v60, %v1283_v60  ;;  %v1392_v18 = vpack.c.bf16 %v1389_v17, %v1389_v17  ;;  %v3338_v17 = vld [vmem:[%s4000_s1 + $0xc8] sm:$0xff]  }
 0x4e5   : > { %3117 = vmatmul.mubr.msk.bf16.vlgmr.msra.gmra.mrb[28].mxu1 %vm187_vm0, %v1290_v16 }
 0x4e6   : > { %3127 = vmatpush3.bf16.msra.mxu1 %v3331_v56  ;;  %3123 = vmatmul.mubr.msk.bf16.vlgmr.msra.gmra.mrb[24].mxu0 %vm187_vm0, %v1286_v61 }
 0x4e7   : > { %3128 = vmatprep.mubr.msk.bf16.mxu1 %vm3419_vm2, %v3418_v39  ;;  %3138 = vmatprep.subr.bf16.mxu1 %v3418_v39 }
 0x4e8   : > { %3134 = vmatprep.mubr.msk.bf16.mxu0 %vm3419_vm2, %v3418_v39  ;;  %3133 = vmatpush3.bf16.msra.mxu0 %v3332_v19 }
 0x4e9   : > { %3144 = vmatprep.subr.bf16.mxu0 %v3418_v39 }
 0x4ed   : > { %3129 = vmatmul.mubr.msk.bf16.vlgmr.msra.gmra.mrb[32].mxu1 %vm187_vm0, %v1392_v18  ;;  %v3339_v18 = vld [vmem:[%s4000_s1 + $0xc0] sm:$0xff]  }
 0x4ee   : > { %3140 = vmatprep.mubr.msk.bf16.mxu1 %vm3419_vm2, %v3418_v39  ;;  %3139 = vmatpush3.bf16.msra.mxu1 %v3333_v20 }
 0x4ef   : > { %3150 = vmatprep.subr.bf16.mxu1 %v3418_v39 }
 0x5b8   : > { %v1334_v21 = vpop.f32.mrb[28].mxu1 }
 0x5b9   : > { %v3118_v22 = vpop.f32.mrb[29].mxu1  ;;  %v1383_v23 = vpop.f32.mrb[24].mxu0 }
 0x5ba   : > { %v1384_v24 = vadd.f32 %v1383_v23, %v1334_v21  ;;  %v1337_v25 = vpop.f32.mrb[30].mxu1  ;;  %v3124_v26 = vpop.f32.mrb[25].mxu0 }
 0x5bb   : > { %v3119_v27 = vpop.f32.mrb[31].mxu1  ;;  %v1386_v29 = vpop.f32.mrb[26].mxu0 }
 0x5bc   : > { %v3125_v30 = vpop.f32.mrb[27].mxu0 }
 0x5bd   : > { %v2879_v30 = vld [vmem:[%s4001_s2 + $0x6] ss:$0 sm:$0xff] }
 0x5c0   : > { %v1436_v31 = vpop.f32.mrb[32].mxu1 }
 0x5c1   : > { %v1442_v33 = vadd.f32 %v1436_v31, %v1384_v24  ;;  %v3130_v34 = vpop.f32.mrb[33].mxu1 }
 0x5c2   : > { %v1439_v35 = vpop.f32.mrb[34].mxu1 }
 0x5c3   : > { %v3131_v36 = vpop.f32.mrb[35].mxu1  ;;  %v1448_v37 = vadd.f32 %v2865_v32, %v1442_v33 }
 0x5c5   : > { %1622 = vrot.lane.b32.xlu1 %v1448_v37, %s3420_s29  ;;  %v1449_v38 = vmax.f32 %v1448_v37, 0.0 }
 0x5c7   : > { %1450 = vst.msk [vmem:[#allocation2 + $0x2] sm:$0xff] %vm187_vm0, %v1449_v38  ;;  %v3340_v38 = vld [vmem:[%s4000_s1 + $0xd0] sm:$0xff]  }
 0x5ce   : > { %v1456_v40 = vld [vmem:[#allocation2 + $0x2] sm:$0xff] }
 0x5cf   : > { %v1451_v42 = vld [vmem:[#allocation2 + $0x1] sm:$0xff]  ;;  %v1459_v43 = vpack.c.bf16 %v1456_v40, %v1456_v40 }
 0x5d0   : > { %v1452_v44 = vsel %vm3689_vm5, 0.0, %v1451_v42  ;;  %v1558_v46 = vld [vmem:[#allocation2 + $0x3] sm:$0xff] }
 0x5d1   : > { %v1455_v50 = vpack.c.bf16 %v1452_v44, %v1452_v44  ;;  %3135 = vmatmul.mubr.msk.bf16.vlgmr.msra.gmra.mrb[28].mxu0 %vm187_vm0, %v1459_v43  ;;  %v1561_v47 = vsel %vm3727_vm6, 0.0, %v1558_v46  ;;  %v3341_v46 = vld [vmem:[%s4000_s1 + $0xe0] sm:$0xff]  }
 0x5d2   : > { %3145 = vmatpush3.bf16.msra.mxu0 %v3334_v41  ;;  %3146 = vmatprep.mubr.msk.bf16.mxu0 %vm3419_vm2, %v3418_v39  ;;  %v1564_v48 = vpack.c.bf16 %v1561_v47, %v1561_v47  ;;  %v3342_v47 = vld [vmem:[%s4000_s1 + $0xd8] sm:$0xff]  }
 0x5d3   : > { %3141 = vmatmul.mubr.msk.bf16.vlgmr.msra.gmra.mrb[36].mxu1 %vm187_vm0, %v1455_v50  ;;  %3156 = vmatprep.subr.bf16.mxu0 %v3418_v39 }
 0x5d4   : > { %3152 = vmatprep.mubr.msk.bf16.mxu1 %vm3419_vm2, %v3418_v39  ;;  %3151 = vmatpush3.bf16.msra.mxu1 %v3335_v28 }
 0x5d5   : > { %3162 = vmatprep.subr.bf16.mxu1 %v3418_v39 }
 0x5d9   : > { %3147 = vmatmul.mubr.msk.bf16.vlgmr.msra.gmra.mrb[32].mxu0 %vm187_vm0, %v1564_v48 }
 0x5da   : > { %3158 = vmatprep.mubr.msk.bf16.mxu0 %vm3419_vm2, %v3418_v39  ;;  %3157 = vmatpush3.bf16.msra.mxu0 %v3336_v49 }
 0x5db   : > { %3168 = vmatprep.subr.bf16.mxu0 %v3418_v39 }
 0x637   : > { %v1623_v8 = vpop.permute.xlu1 %1622 }
 0x6a4   : > { %v1503_v51 = vpop.f32.mrb[28].mxu0 }
 0x6a5   : > { %v3136_v52 = vpop.f32.mrb[29].mxu0 }
 0x6a6   : > { %v1552_v53 = vpop.f32.mrb[36].mxu1  ;;  %v1506_v55 = vpop.f32.mrb[30].mxu0 }
 0x6a7   : > { %v1553_v54 = vadd.f32 %v1552_v53, %v1503_v51  ;;  %v3142_v57 = vpop.f32.mrb[37].mxu1  ;;  %v3137_v58 = vpop.f32.mrb[31].mxu0 }
 0x6a8   : > { %v1555_v62 = vpop.f32.mrb[38].mxu1  ;;  %v2886_v58 = vld [vmem:[%s4001_s2 + $0x7] ss:$0 sm:$0xff] }
 0x6a9   : > { %v3143_v63 = vpop.f32.mrb[39].mxu1 }
 0x6ac   : > { %v1608_v0 = vpop.f32.mrb[32].mxu0 }
 0x6ad   : > { %v1614_v2 = vadd.f32 %v1608_v0, %v1553_v54  ;;  %v3148_v4 = vpop.f32.mrb[33].mxu0 }
 0x6ae   : > { %v1611_v5 = vpop.f32.mrb[34].mxu0 }
 0x6af   : > { %v1620_v6 = vadd.f32 %v2872_v1, %v1614_v2  ;;  %v3149_v7 = vpop.f32.mrb[35].mxu0 }
 0x6b0   : > { %v3353_v7 = vld [vmem:[%s4000_s1 + $0x138] sm:$0xff]  }
 0x6b1   : > { %v3753_v9 = vadd.f32 %v1623_v8, %v1620_v6  ;;  %v1973_v6 = vand.u32 3, %v3497_v3  ;;  %v3343_v8 = vld [vmem:[%s4000_s1 + $0xe8] sm:$0xff]  }
 0x6b3   : > { %v1626_v10 = vmax.f32 %v3753_v9, 0.0  ;;  %vm3820_vm7 = vcmp.eq.s32.totalorder %v1973_v6, 0  ;;  %vm3858_vm9 = vcmp.eq.s32.totalorder %v1973_v6, 3 }
 0x6b5   : > { %1627 = vst.msk [vmem:[#allocation2 + $0x2] sm:$0xff] %vm187_vm0, %v1626_v10 }
 0x6bc   : > { %v1633_v11 = vld [vmem:[#allocation2 + $0x2] sm:$0xff] }
 0x6bd   : > { %v1628_v13 = vld [vmem:[#allocation2 + $0x1] sm:$0xff]  ;;  %v1636_v15 = vpack.c.bf16 %v1633_v11, %v1633_v11 }
 0x6be   : > { %v1629_v56 = vsel %vm3689_vm5, 0.0, %v1628_v13  ;;  %v1735_v16 = vld [vmem:[#allocation2 + $0x3] sm:$0xff] }
 0x6bf   : > { %v1632_v59 = vpack.c.bf16 %v1629_v56, %v1629_v56  ;;  %3153 = vmatmul.mubr.msk.bf16.vlgmr.msra.gmra.mrb[40].mxu1 %vm187_vm0, %v1636_v15  ;;  %v1736_v60 = vsel %vm3727_vm6, 0.0, %v1735_v16  ;;  %v3344_v56 = vld [vmem:[%s4000_s1 + $0xf8] sm:$0xff]  }
 0x6c0   : > { %3163 = vmatpush3.bf16.msra.mxu1 %v3337_v12  ;;  %3164 = vmatprep.mubr.msk.bf16.mxu1 %vm3419_vm2, %v3418_v39  ;;  %v1739_v61 = vpack.c.bf16 %v1736_v60, %v1736_v60 }
 0x6c1   : > { %3159 = vmatmul.mubr.msk.bf16.vlgmr.msra.gmra.mrb[36].mxu0 %vm187_vm0, %v1632_v59  ;;  %3174 = vmatprep.subr.bf16.mxu1 %v3418_v39  ;;  %v3345_v59 = vld [vmem:[%s4000_s1 + $0xf0] sm:$0xff]  }
 0x6c2   : > { %3170 = vmatprep.mubr.msk.bf16.mxu0 %vm3419_vm2, %v3418_v39  ;;  %3169 = vmatpush3.bf16.msra.mxu0 %v3338_v17 }
 0x6c3   : > { %3180 = vmatprep.subr.bf16.mxu0 %v3418_v39 }
 0x6c7   : > { %3165 = vmatmul.mubr.msk.bf16.vlgmr.msra.gmra.mrb[44].mxu1 %vm187_vm0, %v1739_v61 }
 0x6c8   : > { %3176 = vmatprep.mubr.msk.bf16.mxu1 %vm3419_vm2, %v3418_v39  ;;  %3175 = vmatpush3.bf16.msra.mxu1 %v3339_v18 }
 0x6c9   : > { %3186 = vmatprep.subr.bf16.mxu1 %v3418_v39 }
 0x792   : > { %v1680_v19 = vpop.f32.mrb[40].mxu1 }
 0x793   : > { %v3154_v20 = vpop.f32.mrb[41].mxu1 }
 0x794   : > { %v1729_v21 = vpop.f32.mrb[36].mxu0  ;;  %v1683_v23 = vpop.f32.mrb[42].mxu1 }
 0x795   : > { %v1730_v22 = vadd.f32 %v1729_v21, %v1680_v19  ;;  %v3160_v24 = vpop.f32.mrb[37].mxu0  ;;  %v3155_v25 = vpop.f32.mrb[43].mxu1 }
 0x796   : > { %v1732_v26 = vpop.f32.mrb[38].mxu0  ;;  %v2893_v24 = vld [vmem:[%s4001_s2 + $0x8] ss:$0 sm:$0xff] }
 0x797   : > { %v3161_v27 = vpop.f32.mrb[39].mxu0 }
 0x79a   : > { %v1783_v29 = vpop.f32.mrb[44].mxu1 }
 0x79b   : > { %v1789_v31 = vadd.f32 %v1783_v29, %v1730_v22  ;;  %v3166_v32 = vpop.f32.mrb[45].mxu1 }
 0x79c   : > { %v1786_v33 = vpop.f32.mrb[46].mxu1 }
 0x79d   : > { %v1795_v34 = vadd.f32 %v2879_v30, %v1789_v31  ;;  %v3167_v35 = vpop.f32.mrb[47].mxu1  ;;  %v3346_v33 = vld [vmem:[%s4000_s1 + $0x100] sm:$0xff]  }
 0x79f   : > { %v1796_v36 = vmax.f32 %v1795_v34, 0.0 }
 0x7a1   : > { %1797 = vst.msk [vmem:[#allocation2 + $0x2] sm:$0xff] %vm187_vm0, %v1796_v36 }
 0x7a8   : > { %v1803_v37 = vld [vmem:[#allocation2 + $0x2] sm:$0xff] }
 0x7a9   : > { %v1798_v40 = vld [vmem:[#allocation2 + $0x1] sm:$0xff]  ;;  %v1806_v41 = vpack.c.bf16 %v1803_v37, %v1803_v37 }
 0x7aa   : > { %v1799_v42 = vsel %vm3689_vm5, 0.0, %v1798_v40  ;;  %v1905_v44 = vld [vmem:[#allocation2 + $0x3] sm:$0xff] }
 0x7ab   : > { %v1802_v43 = vpack.c.bf16 %v1799_v42, %v1799_v42  ;;  %3171 = vmatmul.mubr.msk.bf16.vlgmr.msra.gmra.mrb[40].mxu0 %vm187_vm0, %v1806_v41  ;;  %v1906_v50 = vsel %vm3727_vm6, 0.0, %v1905_v44  ;;  %v3348_v44 = vld [vmem:[%s4000_s1 + $0x108] sm:$0xff]  }
 0x7ac   : > { %3181 = vmatpush3.bf16.msra.mxu0 %v3340_v38  ;;  %3182 = vmatprep.mubr.msk.bf16.mxu0 %vm3419_vm2, %v3418_v39  ;;  %v1909_v14 = vpack.c.bf16 %v1906_v50, %v1906_v50  ;;  %v2914_v38 = vld [vmem:[%s4001_s2 + $0xb] ss:$0 sm:$0xff] }
 0x7ad   : > { %3177 = vmatmul.mubr.msk.bf16.vlgmr.msra.gmra.mrb[48].mxu1 %vm187_vm0, %v1802_v43  ;;  %3192 = vmatprep.subr.bf16.mxu0 %v3418_v39  ;;  %v3347_v43 = vld [vmem:[%s4000_s1 + $0x110] sm:$0xff]  }
 0x7ae   : > { %3188 = vmatprep.mubr.msk.bf16.mxu1 %vm3419_vm2, %v3418_v39  ;;  %3187 = vmatpush3.bf16.msra.mxu1 %v3341_v46 }
 0x7af   : > { %3198 = vmatprep.subr.bf16.mxu1 %v3418_v39 }
 0x7b3   : > { %3183 = vmatmul.mubr.msk.bf16.vlgmr.msra.gmra.mrb[44].mxu0 %vm187_vm0, %v1909_v14 }
 0x7b4   : > { %3194 = vmatprep.mubr.msk.bf16.mxu0 %vm3419_vm2, %v3418_v39  ;;  %3193 = vmatpush3.bf16.msra.mxu0 %v3342_v47 }
 0x7b5   : > { %3204 = vmatprep.subr.bf16.mxu0 %v3418_v39 }
 0x87e   : > { %v1850_v45 = vpop.f32.mrb[40].mxu0 }
 0x87f   : > { %v3172_v48 = vpop.f32.mrb[41].mxu0 }
 0x880   : > { %v1899_v28 = vpop.f32.mrb[48].mxu1  ;;  %v1853_v51 = vpop.f32.mrb[42].mxu0 }
 0x881   : > { %v1900_v49 = vadd.f32 %v1899_v28, %v1850_v45  ;;  %v3178_v52 = vpop.f32.mrb[49].mxu1  ;;  %v3173_v53 = vpop.f32.mrb[43].mxu0 }
 0x882   : > { %v1902_v54 = vpop.f32.mrb[50].mxu1  ;;  %v2900_v53 = vld [vmem:[%s4001_s2 + $0x9] ss:$0 sm:$0xff] }
 0x883   : > { %v3179_v55 = vpop.f32.mrb[51].mxu1 }
 0x886   : > { %v1953_v57 = vpop.f32.mrb[44].mxu0 }
 0x887   : > { %v1959_v62 = vadd.f32 %v1953_v57, %v1900_v49  ;;  %v3184_v63 = vpop.f32.mrb[45].mxu0 }
 0x888   : > { %v1956_v0 = vpop.f32.mrb[46].mxu0 }
 0x889   : > { %v1965_v1 = vadd.f32 %v2886_v58, %v1959_v62  ;;  %v3185_v2 = vpop.f32.mrb[47].mxu0 }
 0x88b   : > { %v1966_v4 = vadd.f32 %v1965_v1, %v1626_v10 }
 0x88d   : > { %v1967_v5 = vmax.f32 %v1966_v4, 0.0  ;;  %v3349_v4 = vld [vmem:[%s4000_s1 + $0x118] sm:$0xff]  }
 0x88f   : > { %1968 = vst.msk [vmem:[#allocation2 + $0x2] sm:$0xff] %vm187_vm0, %v1967_v5 }
 0x896   : > { %v1990_v11 = vld [vmem:[#allocation2 + $0x2] ss:$2 sm:$0xf]  ;;  %v1983_v12 = vld [vmem:[#allocation2 + $0x1] ss:$2 sm:$0xf] }
 0x897   : > { %v1993_v13 = vpack.c.bf16 %v1990_v11, %v1990_v11  ;;  %v1986_v9 = vsel %vm3820_vm7, 0.0, %v1983_v12  ;;  %v2092_v3 = vld [vmem:[#allocation2 + $0x3] ss:$2 sm:$0xf] }
 0x898   : > { %v1989_v10 = vpack.c.bf16 %v1986_v9, %v1986_v9  ;;  %v2095_v15 = vpack.c.bf16 %v2092_v3, %v2092_v3  ;;  %v3351_v3 = vld [vmem:[%s4000_s1 + $0x120] sm:$0xff]  }
 0x899   : > { %3189 = vmatmul.mubr.msk.bf16.vlgmr.msra.gmra.mrb[52].mxu1 %vm187_vm0, %v1993_v13 }
 0x89a   : > { %3199 = vmatpush3.bf16.msra.mxu1 %v3343_v8  ;;  %3195 = vmatmul.mubr.msk.bf16.vlgmr.msra.gmra.mrb[48].mxu0 %vm187_vm0, %v1989_v10  ;;  %v3350_v10 = vld [vmem:[%s4000_s1 + $0x128] sm:$0xff]  }
 0x89b   : > { %3200 = vmatprep.mubr.msk.bf16.mxu1 %vm3419_vm2, %v3418_v39  ;;  %3210 = vmatprep.subr.bf16.mxu1 %v3418_v39 }
 0x89c   : > { %3206 = vmatprep.mubr.msk.bf16.mxu0 %vm3419_vm2, %v3418_v39  ;;  %3205 = vmatpush3.bf16.msra.mxu0 %v3344_v56 }
 0x89d   : > { %3216 = vmatprep.subr.bf16.mxu0 %v3418_v39 }
 0x8a1   : > { %3201 = vmatmul.mubr.msk.bf16.vlgmr.msra.gmra.mrb[56].mxu1 %vm187_vm0, %v2095_v15 }
 0x8a2   : > { %3212 = vmatprep.mubr.msk.bf16.mxu1 %vm3419_vm2, %v3418_v39  ;;  %3211 = vmatpush3.bf16.msra.mxu1 %v3345_v59 }
 0x8a3   : > { %3222 = vmatprep.subr.bf16.mxu1 %v3418_v39 }
 0x96c   : > { %v2037_v16 = vpop.f32.mrb[52].mxu1 }
 0x96d   : > { %v3190_v60 = vpop.f32.mrb[53].mxu1  ;;  %v2086_v61 = vpop.f32.mrb[48].mxu0 }
 0x96e   : > { %v2087_v17 = vadd.f32 %v2086_v61, %v2037_v16  ;;  %v2040_v18 = vpop.f32.mrb[54].mxu1  ;;  %v3196_v19 = vpop.f32.mrb[49].mxu0 }
 0x96f   : > { %v3191_v20 = vpop.f32.mrb[55].mxu1  ;;  %v2089_v21 = vpop.f32.mrb[50].mxu0 }
 0x970   : > { %v3197_v22 = vpop.f32.mrb[51].mxu0  ;;  %v2907_v21 = vld [vmem:[%s4001_s2 + $0xa] ss:$0 sm:$0xff] }
 0x974   : > { %v2139_v23 = vpop.f32.mrb[56].mxu1 }
 0x975   : > { %v2145_v25 = vadd.f32 %v2139_v23, %v2087_v17  ;;  %v3202_v26 = vpop.f32.mrb[57].mxu1 }
 0x976   : > { %v2142_v27 = vpop.f32.mrb[58].mxu1 }
 0x977   : > { %v2151_v29 = vadd.f32 %v2893_v24, %v2145_v25  ;;  %v3203_v30 = vpop.f32.mrb[59].mxu1 }
 0x978   : > { %v3352_v30 = vld [vmem:[%s4000_s1 + $0x130] sm:$0xff]  }
 0x979   : > { %v2152_v31 = vmax.f32 %v2151_v29, 0.0  ;;  %2326 = vrot.lane.b32.xlu1 %v2151_v29, %s3420_s29  ;;  %s3360_s29 = scalar_lea.vmem %s3359_s26, 32 }
 0x97a   : > { %p3362_p1 = scmp.lt.s32.totalorder %s3360_s29, %s3354_s24 }
 0x97b   : > { %2154 = vst.msk [vmem:[#allocation2 + $0x2] sm:$0xf] %vm2153_vm8, %v2152_v31 }
 0x97c   : > { %p3363_p2 = por %p3362_p1, %p3361_p0 }
 0x97e   : > { %p3364_p3 = pnand %p3363_p2, %p3357_p13 }
 0x982   : > { %v2160_v32 = vld [vmem:[#allocation2 + $0x2] sm:$0xf] }
 0x983   : > { %v2155_v34 = vld [vmem:[#allocation2 + $0x1] sm:$0xf]  ;;  %v2163_v35 = vpack.c.bf16 %v2160_v32, %v2160_v32 }
 0x984   : > { %v2156_v36 = vsel %vm3820_vm7, 0.0, %v2155_v34  ;;  %v2262_v40 = vld [vmem:[#allocation2 + $0x3] sm:$0xf] }
 0x985   : > { %v2159_v37 = vpack.c.bf16 %v2156_v36, %v2156_v36  ;;  %3207 = vmatmul.mubr.msk.bf16.vlgmr.msra.gmra.mrb[52].mxu0 %vm187_vm0, %v2163_v35  ;;  %v2265_v41 = vsel %vm3858_vm9, 0.0, %v2262_v40 }
 0x986   : > { %3217 = vmatpush3.bf16.msra.mxu0 %v3346_v33  ;;  %3218 = vmatprep.mubr.msk.bf16.mxu0 %vm3419_vm2, %v3418_v39  ;;  %v2268_v42 = vpack.c.bf16 %v2265_v41, %v2265_v41 }
 0x987   : > { %3213 = vmatmul.mubr.msk.bf16.vlgmr.msra.gmra.mrb[60].mxu1 %vm187_vm0, %v2159_v37  ;;  %3228 = vmatprep.subr.bf16.mxu0 %v3418_v39 }
 0x988   : > { %3224 = vmatprep.mubr.msk.bf16.mxu1 %vm3419_vm2, %v3418_v39  ;;  %3223 = vmatpush3.bf16.msra.mxu1 %v3347_v43 }
 0x989   : > { %3234 = vmatprep.subr.bf16.mxu1 %v3418_v39 }
 0x98d   : > { %3219 = vmatmul.mubr.msk.bf16.vlgmr.msra.gmra.mrb[56].mxu0 %vm187_vm0, %v2268_v42 }
 0x98e   : > { %3230 = vmatprep.mubr.msk.bf16.mxu0 %vm3419_vm2, %v3418_v39  ;;  %3229 = vmatpush3.bf16.msra.mxu0 %v3348_v44 }
 0x98f   : > { %3240 = vmatprep.subr.bf16.mxu0 %v3418_v39 }
 0x9eb   : > { %v2327_v63 = vpop.permute.xlu1 %2326 }
 0xa58   : > { %v2207_v50 = vpop.f32.mrb[52].mxu0 }
 0xa59   : > { %v3208_v14 = vpop.f32.mrb[53].mxu0 }
 0xa5a   : > { %v2256_v46 = vpop.f32.mrb[60].mxu1  ;;  %v2210_v45 = vpop.f32.mrb[54].mxu0 }
 0xa5b   : > { %v2257_v47 = vadd.f32 %v2256_v46, %v2207_v50  ;;  %v3214_v48 = vpop.f32.mrb[61].mxu1  ;;  %v3209_v28 = vpop.f32.mrb[55].mxu0 }
 0xa5c   : > { %v2259_v49 = vpop.f32.mrb[62].mxu1 }
 0xa5d   : > { %v3215_v51 = vpop.f32.mrb[63].mxu1 }
 0xa60   : > { %v2312_v52 = vpop.f32.mrb[56].mxu0 }
 0xa61   : > { %v2318_v54 = vadd.f32 %v2312_v52, %v2257_v47  ;;  %v3220_v55 = vpop.f32.mrb[57].mxu0 }
 0xa62   : > { %v2315_v57 = vpop.f32.mrb[58].mxu0  ;;  %v2916_v55 = vld [vmem:[%s4001_s2 + $0xd] ss:$0 sm:$0xff] }
 0xa63   : > { %v2324_v58 = vadd.f32 %v2900_v53, %v2318_v54  ;;  %v3221_v62 = vpop.f32.mrb[59].mxu0  ;;  %v2915_v53 = vld [vmem:[%s4001_s2 + $0xc] ss:$0 sm:$0xff] }
 0xa65   : > { %v3884_v0 = vadd.f32 %v2327_v63, %v2324_v58 }
 0xa67   : > { %v2330_v1 = vmax.f32 %v3884_v0, 0.0 }
 0xa69   : > { %2331 = vst.msk [vmem:[#allocation2 + $0x2] sm:$0xf] %vm2153_vm8, %v2330_v1 }
 0xa70   : > { %v2337_v2 = vld [vmem:[#allocation2 + $0x2] sm:$0xf] }
 0xa71   : > { %v2332_v5 = vld [vmem:[#allocation2 + $0x1] sm:$0xf]  ;;  %v2340_v6 = vpack.c.bf16 %v2337_v2, %v2337_v2 }
 0xa72   : > { %v2333_v8 = vsel %vm3820_vm7, 0.0, %v2332_v5  ;;  %v2439_v12 = vld [vmem:[#allocation2 + $0x3] sm:$0xf] }
 0xa73   : > { %v2336_v11 = vpack.c.bf16 %v2333_v8, %v2333_v8  ;;  %3225 = vmatmul.mubr.msk.bf16.vlgmr.msra.gmra.mrb[64].mxu1 %vm187_vm0, %v2340_v6  ;;  %v2440_v13 = vsel %vm3858_vm9, 0.0, %v2439_v12  ;;  %v2696_v12 = vld [vmem:[%s4001_s2 + $0xe] sm:$0x1] }
 0xa74   : > { %3235 = vmatpush3.bf16.msra.mxu1 %v3349_v4  ;;  %3236 = vmatprep.mubr.msk.bf16.mxu1 %vm3419_vm2, %v3418_v39  ;;  %v2443_v9 = vpack.c.bf16 %v2440_v13, %v2440_v13 }
 0xa75   : > { %3231 = vmatmul.mubr.msk.bf16.vlgmr.msra.gmra.mrb[60].mxu0 %vm187_vm0, %v2336_v11  ;;  %3246 = vmatprep.subr.bf16.mxu1 %v3418_v39 }
 0xa76   : > { %3242 = vmatprep.mubr.msk.bf16.mxu0 %vm3419_vm2, %v3418_v39  ;;  %3241 = vmatpush3.bf16.msra.mxu0 %v3350_v10 }
 0xa77   : > { %3252 = vmatprep.subr.bf16.mxu0 %v3418_v39 }
 0xa7b   : > { %3237 = vmatmul.mubr.msk.bf16.vlgmr.msra.gmra.mrb[68].mxu1 %vm187_vm0, %v2443_v9 }
 0xa7c   : > { %3248 = vmatprep.mubr.msk.bf16.mxu1 %vm3419_vm2, %v3418_v39  ;;  %3247 = vmatpush3.bf16.msra.mxu1 %v3351_v3 }
 0xa7d   : > { %3258 = vmatprep.subr.bf16.mxu1 %v3418_v39 }
 0xb46   : > { %v2384_v15 = vpop.f32.mrb[64].mxu1 }
 0xb47   : > { %v3226_v56 = vpop.f32.mrb[65].mxu1 }
 0xb48   : > { %v2433_v59 = vpop.f32.mrb[60].mxu0  ;;  %v2387_v60 = vpop.f32.mrb[66].mxu1 }
 0xb49   : > { %v2434_v16 = vadd.f32 %v2433_v59, %v2384_v15  ;;  %v3232_v61 = vpop.f32.mrb[61].mxu0  ;;  %v3227_v17 = vpop.f32.mrb[67].mxu1 }
 0xb4a   : > { %v2436_v18 = vpop.f32.mrb[62].mxu0 }
 0xb4b   : > { %v3233_v19 = vpop.f32.mrb[63].mxu0 }
 0xb4e   : > { %v2487_v20 = vpop.f32.mrb[68].mxu1 }
 0xb4f   : > { %v2493_v22 = vadd.f32 %v2487_v20, %v2434_v16  ;;  %v3238_v23 = vpop.f32.mrb[69].mxu1 }
 0xb50   : > { %v2490_v24 = vpop.f32.mrb[70].mxu1 }
 0xb51   : > { %v2499_v25 = vadd.f32 %v2907_v21, %v2493_v22  ;;  %v3239_v26 = vpop.f32.mrb[71].mxu1 }
 0xb53   : > { %v2500_v27 = vmax.f32 %v2499_v25, 0.0 }
 0xb55   : > { %2501 = vst.msk [vmem:[#allocation2 + $0x2] sm:$0xf] %vm2153_vm8, %v2500_v27 }
 0xb5c   : > { %v2507_v29 = vld [vmem:[#allocation2 + $0x2] sm:$0xf] }
 0xb5d   : > { %v2502_v31 = vld [vmem:[#allocation2 + $0x1] sm:$0xf]  ;;  %v2510_v32 = vpack.c.bf16 %v2507_v29, %v2507_v29 }
 0xb5e   : > { %v2503_v33 = vsel %vm3820_vm7, 0.0, %v2502_v31  ;;  %v2609_v35 = vld [vmem:[#allocation2 + $0x3] sm:$0xf] }
 0xb5f   : > { %v2506_v34 = vpack.c.bf16 %v2503_v33, %v2503_v33  ;;  %3243 = vmatmul.mubr.msk.bf16.vlgmr.msra.gmra.mrb[64].mxu0 %vm187_vm0, %v2510_v32  ;;  %v2610_v36 = vsel %vm3858_vm9, 0.0, %v2609_v35 }
 0xb60   : > { %3253 = vmatpush3.bf16.msra.mxu0 %v3352_v30  ;;  %3254 = vmatprep.mubr.msk.bf16.mxu0 %vm3419_vm2, %v3418_v39  ;;  %v2613_v37 = vpack.c.bf16 %v2610_v36, %v2610_v36 }
 0xb61   : > { %3249 = vmatmul.mubr.msk.bf16.vlgmr.msra.gmra.mrb[72].mxu1 %vm187_vm0, %v2506_v34 }
 0xb62   : > { %3260 = vmatprep.mubr.msk.bf16.mxu1 %vm3419_vm2, %v3418_v39  ;;  %3259 = vmatpush3.bf16.msra.mxu1 %v3353_v7 }
 0xb67   : > { %3255 = vmatmul.mubr.msk.bf16.vlgmr.msra.gmra.mrb[68].mxu0 %vm187_vm0, %v2613_v37 }
 0xc32   : > { %v2554_v40 = vpop.f32.mrb[64].mxu0 }
 0xc33   : > { %v3244_v41 = vpop.f32.mrb[65].mxu0 }
 0xc34   : > { %v2603_v42 = vpop.f32.mrb[72].mxu1  ;;  %v2557_v44 = vpop.f32.mrb[66].mxu0 }
 0xc35   : > { %v2604_v43 = vadd.f32 %v2603_v42, %v2554_v40  ;;  %v3250_v50 = vpop.f32.mrb[73].mxu1  ;;  %v3245_v14 = vpop.f32.mrb[67].mxu0 }
 0xc36   : > { %v2606_v46 = vpop.f32.mrb[74].mxu1 }
 0xc37   : > { %v3251_v39 = vpop.f32.mrb[75].mxu1 }
 0xc3a   : > { %v2657_v47 = vpop.f32.mrb[68].mxu0 }
 0xc3b   : > { %v2663_v45 = vadd.f32 %v2657_v47, %v2604_v43  ;;  %v3256_v48 = vpop.f32.mrb[69].mxu0 }
 0xc3c   : > { %v2660_v28 = vpop.f32.mrb[70].mxu0 }
 0xc3d   : > { %v2669_v49 = vadd.f32 %v2914_v38, %v2663_v45  ;;  %v3257_v51 = vpop.f32.mrb[71].mxu0 }
 0xc3f   : > { %v2670_v52 = vadd.f32 %v2669_v49, %v2330_v1 }
 0xc41   : > { %v2671_v54 = vmax.f32 %v2670_v52, 0.0 }
 0xc43   : > { %v2677_v57 = vmul.f32 %v2915_v53, %v2671_v54 }
 0xc45   : > { %v2683_v58 = vadd.f32 %v2916_v55, %v2677_v57 }
 0xc47   : > { %v2684_v62 = vmax.f32 %v2683_v58, 0.0 }
 0xc49   : > { %v2685_v63 = vsel %vm2153_vm8, %v2684_v62, 0.0 }
 0xc4a   : > { %v2686_v2 = vrot.slane %v2685_v63, 4 }
 0xc4c   : > { %v2687_v4 = vadd.f32 %v2686_v2, %v2685_v63 }
 0xc4e   : > { %v2688_v0 = vrot.slane %v2687_v4, 2 }
 0xc50   : > { %v2689_v1 = vadd.f32 %v2688_v0, %v2687_v4 }
 0xc52   : > { %v2690_v5 = vrot.slane %v2689_v1, 1 }
 0xc54   : > { %v2691_v6 = vadd.f32 %v2690_v5, %v2689_v1 }
 0xc56   : > { %v2692_v8 = vmul.f32 0.25, %v2691_v6 }
 0xc58   : > { %v2695_v11 = vpack.c.bf16 %v2692_v8, %v2692_v8 }
 0xc5a   : > { %3261 = vmatmul.mubr.msk.bf16.vlgmr.msra.gmra.mrb[76].mxu1 %vm187_vm0, %v2695_v11 }
 0xd2d   : > { %v2740_v13 = vpop.f32.mrb[76].mxu1 }
 0xd2e   : > { %v2741_v9 = vadd.f32 %v2740_v13, %v2696_v12  ;;  %v3262_v10 = vpop.f32.mrb[77].mxu1 }
 0xd2f   : > { %v2743_v3 = vpop.f32.mrb[78].mxu1 }
 0xd30   : > { %v3263_v15 = vpop.f32.mrb[79].mxu1  ;;  %2747 = vst.msk [vmem:[%s163_s10] sm:$0x1] %vm2746_vm10, %v2741_v9 }
 0xd31   : > { %3367 = shalt.err (!%p3364_p3)
}
 0xd32   : > { %s3368_s27 = scalar_lea.hbm %s3957_s20, 16  ;;  %s3372_s4 = scalar_lea.hbm %s4002_s3, 32 }
 0xd33   : > { %p3369_p4 = scmp.ne.s32.totalorder %s3957_s20, %s3368_s27  ;;  %p3373_p9 = scmp.lt.u32.totalorder %s3957_s20, %s4002_s3 }
 0xd34   : > { %p3374_p10 = scmp.lt.u32.totalorder %s3372_s4, %s3368_s27  ;;  %p3376_p12 = scmp.lt.u32.totalorder %s3368_s27, %s3957_s20 }
 0xd35   : > { %p3370_p7 = pnand %p3369_p4, %p3480_p5 }
 0xd36   : > { %p3375_p11 = por %p3374_p10, %p3373_p9 }
 0xd37   : > { %p3371_p8 = pneg %p3370_p7 }
 0xd38   : > { %p3377_p13 = por %p3376_p12, %p3375_p11 }
 0xd3a   : > { %p3378_p0 = pnand %p3377_p13, %p3371_p8 }
 0xd3c   : > { %3381 = shalt.err (!%p3378_p0)
}
 0xd3d   : > { %3272 = dma.vmem_to_hbm [thread:$0]  (%p3480_p5), %s3959_s11, 16, %s3957_s20, %s2749_s16  }
 0xd3e PF: > { %p3278_p1 = scmp.ge.s32.totalorder %s3416_s15, 2  ;;  %s2773_s7 = sand.u32 1, %s3404_s12  }
 0xd3f   : > { %s2774_s8 = scalar_lea.sflag [#allocation4], %s2773_s7 }
 0xd40   : > { %p3275_p2 = pnand %p3278_p1, %p3484_p6 }
 0xd42   : > { %3399 = dma.done.wait (!%p3275_p2), %s2774_s8, 16  }
 0xd43   : > { %3401 = vsyncadd (!%p3275_p2), %s2774_s8, 4294967280  ;;  %p13_p3 = scmp.ge.s32.totalorder %s3467_s18, 4   ;;  %s4019_s12 = smov %s3408_s13 }
 0xd44   : > { %s4020_s13 = smov %s3412_s14  ;;  %s4021_s14 = smov %s3478_s21 }
 0xd45   : > { %s4022_s15 = smov %s3467_s18  ;;  %15 = sbr.rel (!%p13_p3) target bundleno = 3 (0x3), region = 79 }
 0xd4c   :  { %2778 = vsyncpa [#allocation4], 1 }
 0xd4d   :  { %2780 = vsyncpa [#allocation4 + $0x1], 1 }

</bundles_post_ra>
